<compile_context>
chip_gen: v7x
topology: tpu7x:2x2x1
jax: 0.10.0
libtpu: 0.0.40
codegen_flags: <defaults>
</compile_context>

<pallas_src>
import functools

import jax
import jax.numpy as jnp
from jax.experimental import pallas as pl
from jax.experimental.pallas import tpu as pltpu

N = 4            # logical number of neurons (module default)
NP = 128         # lane-padded neuron count
PARAM_ROWS = 16  # sublane-padded packed parameter rows
TC = 16          # time steps per grid iteration (chunk)

# packed parameter-block row indices
(_R_EL, _R_GOT, _R_NRCOT, _R_ITAUS, _R_1MB, _R_DTS, _R_FV, _R_DV,
 _R_V0, _R_S0, _R_TH0) = range(11)


def _lif_r_kernel(wsynT_ref, params_ref, iin_ref,
                  v_out_ref, soft_out_ref, state_ref,
                  v_sc, s_sc, theta_sc,
                  *, tc, g_final, r_final):
    g = pl.program_id(0)

    @pl.when(g == 0)
    def _init():
        v_sc[...] = params_ref[_R_V0:_R_V0 + 1, :]
        s_sc[...] = params_ref[_R_S0:_R_S0 + 1, :]
        theta_sc[...] = params_ref[_R_TH0:_R_TH0 + 1, :]
        state_ref[...] = jnp.zeros_like(state_ref)

    # Hoisted ONCE per chunk (not per step): parameter rows + resident weights.
    E_L = params_ref[_R_EL:_R_EL + 1, :]
    G_ot = params_ref[_R_GOT:_R_GOT + 1, :]          # G / tau_m
    nrc_ot = params_ref[_R_NRCOT:_R_NRCOT + 1, :]    # norm_R_const / tau_m
    inv_tau_s = params_ref[_R_ITAUS:_R_ITAUS + 1, :]
    one_m_bs = params_ref[_R_1MB:_R_1MB + 1, :]
    dts = params_ref[_R_DTS:_R_DTS + 1, :]
    f_v = params_ref[_R_FV:_R_FV + 1, :]
    dV = params_ref[_R_DV:_R_DV + 1, :]
    W = wsynT_ref[...]                               # (NP, NP) W_syn^T, VMEM-resident

    v = v_sc[...]                                    # (1, NP)
    s = s_sc[...]
    theta = theta_sc[...]
    base = g * tc

    v_fin, s_fin, th_fin = v, s, theta
    for i in range(tc):                              # fully unrolled chunk
        # I_syn[n] = sum_j W_syn[n, j] * s[j]  ==  s @ W_syn^T   (MXU matvec)
        I_syn = jnp.dot(s, W, preferred_element_type=jnp.float32)   # (1, NP)
        I_tot = I_syn + iin_ref[base + i]            # scalar I_in[t] from SMEM

        v_next = v + G_ot * (E_L - v) + I_tot * nrc_ot
        spiked = (v_next >= theta).astype(jnp.float32)
        not_spiked = 1.0 - spiked
        soft = jax.nn.sigmoid(v_next - theta)

        s = spiked + not_spiked * (s - s * inv_tau_s)
        theta = one_m_bs * theta + spiked * dts
        v_reset = E_L + f_v * (v - E_L) - dV
        v = spiked * v_reset + not_spiked * v_next

        # dense rows of a (TC, NP) output block — unmasked, sublane/lane-dense
        v_out_ref[i:i + 1, :] = v
        soft_out_ref[i:i + 1, :] = soft

        if i == r_final:                             # static capture of state at step T-1
            v_fin, s_fin, th_fin = v, s, theta

    # carry state to next chunk
    v_sc[...] = v
    s_sc[...] = s
    theta_sc[...] = theta

    @pl.when(g == g_final)
    def _final():
        state_ref[0:1, :] = v_fin
        state_ref[1:2, :] = s_fin
        state_ref[2:3, :] = th_fin


def lif_r_rollout(params, state, I_ext_seq):
    """Run T LIF_R forward steps in one Pallas call.

    Returns (v_seq, soft_seq, new_state) with v_seq/soft_seq of shape (T, N).
    """
    I_ext_seq = jnp.asarray(I_ext_seq, jnp.float32)
    T_steps = int(I_ext_seq.shape[0])
    v0, s0, theta0 = state

    # Step-invariant synaptic weights, precomputed and pre-transposed.
    W_syn = params["mask"] * params["w"] * params["neuron_types"]           # (N, N)
    W_syn_T = jnp.zeros((NP, NP), jnp.float32).at[:N, :N].set(W_syn.T.astype(jnp.float32))

    # I_in[t] = dot(W_in, I_ext[t]) for all steps, zero-padded to whole chunks.
    num_chunks = pl.cdiv(T_steps, TC)
    T_pad = num_chunks * TC
    I_in = jnp.sum(I_ext_seq * params["W_in"].astype(jnp.float32)[None, :], axis=1)
    I_in = jnp.zeros((T_pad,), jnp.float32).at[:T_steps].set(I_in)

    g_final = (T_steps - 1) // TC       # chunk containing step T-1
    r_final = (T_steps - 1) % TC        # position of step T-1 within that chunk

    # Packed (16, NP) parameter block.  Pad lanes: 0 everywhere except
    # one_minus_b_s == 1 and theta0 == 1e30 so padded lanes never spike.
    tau_m = params["tau_m"].astype(jnp.float32)
    pb = jnp.zeros((PARAM_ROWS, NP), jnp.float32)
    pb = pb.at[_R_1MB, :].set(1.0)
    pb = pb.at[_R_TH0, :].set(1e30)
    for row, x in (
        (_R_EL, params["E_L"]),
        (_R_GOT, params["G"] / tau_m),
        (_R_NRCOT, params["norm_R_const"] / tau_m),
        (_R_ITAUS, 1.0 / params["tau_s"]),
        (_R_1MB, 1.0 - params["b_s"]),
        (_R_DTS, params["delta_theta_s"]),
        (_R_FV, params["f_v"]),
        (_R_DV, params["delta_V"]),
        (_R_V0, v0),
        (_R_S0, s0),
        (_R_TH0, theta0),
    ):
        pb = pb.at[row, :N].set(jnp.asarray(x, jnp.float32))

    kernel = functools.partial(_lif_r_kernel, tc=TC, g_final=g_final, r_final=r_final)

    v_out, soft_out, state_out = pl.pallas_call(
        kernel,
        out_shape=(
            jax.ShapeDtypeStruct((T_pad, NP), jnp.float32),   # v per step
            jax.ShapeDtypeStruct((T_pad, NP), jnp.float32),   # soft-spike per step
            jax.ShapeDtypeStruct((8, NP), jnp.float32),       # final (v, s, theta)
        ),
        grid_spec=pltpu.PrefetchScalarGridSpec(
            num_scalar_prefetch=0,
            grid=(num_chunks,),
            in_specs=[
                pl.BlockSpec((NP, NP), lambda g: (0, 0)),            # W_syn^T (resident)
                pl.BlockSpec((PARAM_ROWS, NP), lambda g: (0, 0)),    # packed params (resident)
                pl.BlockSpec(memory_space=pltpu.MemorySpace.SMEM),   # I_in, whole (T_pad,) in SMEM
            ],
            out_specs=[
                pl.BlockSpec((TC, NP), lambda g: (g, 0)),
                pl.BlockSpec((TC, NP), lambda g: (g, 0)),
                pl.BlockSpec((8, NP), lambda g: (0, 0)),
            ],
            scratch_shapes=[
                pltpu.VMEM((1, NP), jnp.float32),   # v
                pltpu.VMEM((1, NP), jnp.float32),   # s
                pltpu.VMEM((1, NP), jnp.float32),   # theta_s
            ],
        ),
        compiler_params=pltpu.CompilerParams(
            dimension_semantics=("arbitrary",),     # state carries chunk -> chunk
        ),
    )(W_syn_T, pb, I_in)

    v_seq = v_out[:T_steps, :N]
    soft_seq = soft_out[:T_steps, :N]
    new_state = (state_out[0, :N], state_out[1, :N], state_out[2, :N])
    return v_seq, soft_seq, new_state


def _reference_rollout(params, state, I_ext_seq):
    # Pure-JAX reference mirroring the PyTorch forward exactly, scanned over T steps.
    W_syn = params["mask"] * params["w"] * params["neuron_types"]

    def step(carry, I_ext):
        v, s, theta = carry
        I_syn = jnp.sum(W_syn * s[None, :], axis=1)
        I_tot = I_syn + jnp.dot(params["W_in"], I_ext)
        dv = (params["G"] * (params["E_L"] - v) + I_tot * params["norm_R_const"]) / params["tau_m"]
        v_next = v + dv
        spiked = (v_next >= theta).astype(jnp.float32)
        not_spiked = (spiked - 1.0) / -1.0
        soft = jax.nn.sigmoid(v_next - theta)
        ds = -s / params["tau_s"]
        s_new = spiked + not_spiked * (s + ds)
        theta_new = (1.0 - params["b_s"]) * theta + spiked * params["delta_theta_s"]
        v_reset = params["E_L"] + params["f_v"] * (v - params["E_L"]) - params["delta_V"]
        v_new = spiked * v_reset + not_spiked * v_next
        return (v_new, s_new, theta_new), (v_new, soft)

    final, (v_seq, soft_seq) = jax.lax.scan(step, state, I_ext_seq)
    return v_seq, soft_seq, final


def make_params(key):
    # Deterministic synthetic init following LIF_R.__init__ (midpoints of the
    # documented parameter_init_intervals; clamps are already satisfied).
    k_w, k_win = jax.random.split(key, 2)
    w_mean, w_var = 0.4, 0.25
    w = w_mean - w_var + 2.0 * w_var * jax.random.uniform(k_w, (N, N), jnp.float32)
    W_in = jax.random.uniform(k_win, (N,), jnp.float32)

    ones = jnp.ones((N,), jnp.float32)
    E_L = -60.0 * ones
    tau_m = 3.75 * ones
    G = 0.75 * ones
    f_v = 0.30 * ones
    delta_theta_s = 15.0 * ones
    b_s = 0.30 * ones
    delta_V = 11.0 * ones
    tau_s = 5.5 * ones

    norm_R_const = (delta_theta_s - E_L) * 1.1
    mask = jnp.ones((N, N), jnp.float32) - jnp.eye(N, dtype=jnp.float32)
    nt_vec = jnp.array([1.0, 1.0, -1.0, -1.0], jnp.float32)   # length-N neuron types
    neuron_types = nt_vec * jnp.ones((N, N), jnp.float32)     # column j scaled by nt[j]

    return dict(
        w=w, W_in=W_in, E_L=E_L, tau_m=tau_m, G=G, f_v=f_v,
        delta_theta_s=delta_theta_s, b_s=b_s, delta_V=delta_V, tau_s=tau_s,
        norm_R_const=norm_R_const, mask=mask, neuron_types=neuron_types,
    )
    # TODO(synk): register_backward_clamp_hooks (training-time gradient clamps) and the
    # W_out readout parameter are not part of the forward pass and have no Pallas equivalent.


if __name__ == "__main__":
    key = jax.random.PRNGKey(0)
    k_params, k_iext = jax.random.split(key)
    params = make_params(k_params)

    # Initial hidden state as in __init__: v = 0, s = 0, theta_s = delta_theta_s
    v0 = jnp.zeros((N,), jnp.float32)
    s0 = jnp.zeros((N,), jnp.float32)
    theta0 = params["delta_theta_s"]
    state = (v0, s0, theta0)

    T_steps = 64
    I_ext_seq = jax.random.uniform(k_iext, (T_steps, N), jnp.float32)

    v_seq, soft_seq, new_state = lif_r_rollout(params, state, I_ext_seq)
    jax.block_until_ready((v_seq, soft_seq, new_state))

    v_ref, soft_ref, state_ref = _reference_rollout(params, state, I_ext_seq)
    assert jnp.allclose(v_seq, v_ref, atol=1e-4, rtol=1e-4), float(jnp.max(jnp.abs(v_seq - v_ref)))
    assert jnp.allclose(soft_seq, soft_ref, atol=1e-4, rtol=1e-4)
    assert jnp.allclose(new_state[0], state_ref[0], atol=1e-4, rtol=1e-4)
    assert jnp.allclose(new_state[1], state_ref[1], atol=1e-4, rtol=1e-4)
    assert jnp.allclose(new_state[2], state_ref[2], atol=1e-4, rtol=1e-4)

    print("KERNEL_OK")
</pallas_src>

<mosaic_0001>
module attributes {stable_mosaic.version = 11 : i64} {
  func.func @_lif_r_kernel(%arg0: i32, %arg1: memref<128x128xf32, #tpu.memory_space<vmem>>, %arg2: memref<16x128xf32, #tpu.memory_space<vmem>>, %arg3: memref<64xf32, #tpu.memory_space<smem>>, %arg4: memref<16x128xf32, #tpu.memory_space<vmem>>, %arg5: memref<16x128xf32, #tpu.memory_space<vmem>>, %arg6: memref<8x128xf32, #tpu.memory_space<vmem>>, %arg7: memref<1x128xf32, #tpu.memory_space<vmem>>, %arg8: memref<1x128xf32, #tpu.memory_space<vmem>>, %arg9: memref<1x128xf32, #tpu.memory_space<vmem>>) attributes {dimension_semantics = [#tpu.dimension_semantics<arbitrary>], iteration_bounds = array<i64: 4>, scalar_prefetch = 0 : i64, scratch_operands = 3 : i64, tpu.core_type = #tpu.core_type<tc>, window_params = [{pipeline_mode = #tpu.pipeline_mode<synchronous>, transform_indices = @transform_0, window_bounds = array<i64: 128, 128>}, {pipeline_mode = #tpu.pipeline_mode<synchronous>, transform_indices = @transform_1, window_bounds = array<i64: 16, 128>}, {transform_indices = @transform_2, window_bounds = array<i64: 64>}, {transform_indices = @transform_3, window_bounds = array<i64: 16, 128>}, {transform_indices = @transform_4, window_bounds = array<i64: 16, 128>}, {pipeline_mode = #tpu.pipeline_mode<synchronous>, transform_indices = @transform_5, window_bounds = array<i64: 8, 128>}]} {
    %c0_i32 = arith.constant 0 : i32
    %0 = arith.cmpi eq, %arg0, %c0_i32 : i32
    %1 = arith.extui %0 : i1 to i32
    %c0_i32_0 = arith.constant 0 : i32
    %2 = arith.cmpi ne, %1, %c0_i32_0 : i32
    scf.if %2 {
      %c8_129 = arith.constant 8 : index
      %c0_130 = arith.constant 0 : index
      %630 = vector.load %arg2[%c8_129, %c0_130] : memref<16x128xf32, #tpu.memory_space<vmem>>, vector<1x128xf32>
      %c0_131 = arith.constant 0 : index
      %c0_132 = arith.constant 0 : index
      %631 = vector.load %arg7[%c0_131, %c0_132] : memref<1x128xf32, #tpu.memory_space<vmem>>, vector<1x128xf32>
      tpu.vector_store %arg7[%c0_131, %c0_132], %630 {strides = array<i32>} : memref<1x128xf32, #tpu.memory_space<vmem>>, vector<1x128xf32>,
      %c9_133 = arith.constant 9 : index
      %c0_134 = arith.constant 0 : index
      %632 = vector.load %arg2[%c9_133, %c0_134] : memref<16x128xf32, #tpu.memory_space<vmem>>, vector<1x128xf32>
      %c0_135 = arith.constant 0 : index
      %c0_136 = arith.constant 0 : index
      %633 = vector.load %arg8[%c0_135, %c0_136] : memref<1x128xf32, #tpu.memory_space<vmem>>, vector<1x128xf32>
      tpu.vector_store %arg8[%c0_135, %c0_136], %632 {strides = array<i32>} : memref<1x128xf32, #tpu.memory_space<vmem>>, vector<1x128xf32>,
      %c10_137 = arith.constant 10 : index
      %c0_138 = arith.constant 0 : index
      %634 = vector.load %arg2[%c10_137, %c0_138] : memref<16x128xf32, #tpu.memory_space<vmem>>, vector<1x128xf32>
      %c0_139 = arith.constant 0 : index
      %c0_140 = arith.constant 0 : index
      %635 = vector.load %arg9[%c0_139, %c0_140] : memref<1x128xf32, #tpu.memory_space<vmem>>, vector<1x128xf32>
      tpu.vector_store %arg9[%c0_139, %c0_140], %634 {strides = array<i32>} : memref<1x128xf32, #tpu.memory_space<vmem>>, vector<1x128xf32>,
      %cst_141 = arith.constant 0.000000e+00 : f32
      %636 = vector.broadcast %cst_141 : f32 to vector<8x128xf32>
      %c0_142 = arith.constant 0 : index
      %c0_143 = arith.constant 0 : index
      %637 = vector.load %arg6[%c0_142, %c0_143] : memref<8x128xf32, #tpu.memory_space<vmem>>, vector<8x128xf32>
      tpu.vector_store %arg6[%c0_142, %c0_143], %636 {strides = array<i32>} : memref<8x128xf32, #tpu.memory_space<vmem>>, vector<8x128xf32>,
    } else {
    }
    %c0 = arith.constant 0 : index
    %c0_1 = arith.constant 0 : index
    %3 = vector.load %arg2[%c0, %c0_1] : memref<16x128xf32, #tpu.memory_space<vmem>>, vector<1x128xf32>
    %c1 = arith.constant 1 : index
    %c0_2 = arith.constant 0 : index
    %4 = vector.load %arg2[%c1, %c0_2] : memref<16x128xf32, #tpu.memory_space<vmem>>, vector<1x128xf32>
    %c2 = arith.constant 2 : index
    %c0_3 = arith.constant 0 : index
    %5 = vector.load %arg2[%c2, %c0_3] : memref<16x128xf32, #tpu.memory_space<vmem>>, vector<1x128xf32>
    %c3 = arith.constant 3 : index
    %c0_4 = arith.constant 0 : index
    %6 = vector.load %arg2[%c3, %c0_4] : memref<16x128xf32, #tpu.memory_space<vmem>>, vector<1x128xf32>
    %c4 = arith.constant 4 : index
    %c0_5 = arith.constant 0 : index
    %7 = vector.load %arg2[%c4, %c0_5] : memref<16x128xf32, #tpu.memory_space<vmem>>, vector<1x128xf32>
    %c5 = arith.constant 5 : index
    %c0_6 = arith.constant 0 : index
    %8 = vector.load %arg2[%c5, %c0_6] : memref<16x128xf32, #tpu.memory_space<vmem>>, vector<1x128xf32>
    %c6 = arith.constant 6 : index
    %c0_7 = arith.constant 0 : index
    %9 = vector.load %arg2[%c6, %c0_7] : memref<16x128xf32, #tpu.memory_space<vmem>>, vector<1x128xf32>
    %c7 = arith.constant 7 : index
    %c0_8 = arith.constant 0 : index
    %10 = vector.load %arg2[%c7, %c0_8] : memref<16x128xf32, #tpu.memory_space<vmem>>, vector<1x128xf32>
    %c0_9 = arith.constant 0 : index
    %c0_10 = arith.constant 0 : index
    %11 = vector.load %arg1[%c0_9, %c0_10] : memref<128x128xf32, #tpu.memory_space<vmem>>, vector<128x128xf32>
    %c0_11 = arith.constant 0 : index
    %c0_12 = arith.constant 0 : index
    %12 = vector.load %arg7[%c0_11, %c0_12] : memref<1x128xf32, #tpu.memory_space<vmem>>, vector<1x128xf32>
    %c0_13 = arith.constant 0 : index
    %c0_14 = arith.constant 0 : index
    %13 = vector.load %arg8[%c0_13, %c0_14] : memref<1x128xf32, #tpu.memory_space<vmem>>, vector<1x128xf32>
    %c0_15 = arith.constant 0 : index
    %c0_16 = arith.constant 0 : index
    %14 = vector.load %arg9[%c0_15, %c0_16] : memref<1x128xf32, #tpu.memory_space<vmem>>, vector<1x128xf32>
    %c16_i32 = arith.constant 16 : i32
    %15 = arith.muli %arg0, %c16_i32 : i32
    %cst = arith.constant dense<0.000000e+00> : vector<1x128xf32>
    %16 = tpu.matmul %13, %11, %cst {dimension_numbers = #tpu.dot_dimension_numbers<[1], [0], [0], [1], [0, 0, 1, 1], [], []>} : vector<1x128xf32>, vector<128x128xf32>, vector<1x128xf32> -> vector<1x128xf32>
    %c0_i32_17 = arith.constant 0 : i32
    %17 = arith.addi %15, %c0_i32_17 : i32
    %18 = arith.index_cast %17 : i32 to index
    %19 = memref.load %arg3[%18] : memref<64xf32, #tpu.memory_space<smem>>
    %20 = vector.broadcast %19 : f32 to vector<1x128xf32>
    %21 = arith.addf %16, %20 : vector<1x128xf32>
    %22 = arith.subf %3, %12 : vector<1x128xf32>
    %23 = arith.mulf %4, %22 : vector<1x128xf32>
    %24 = arith.addf %12, %23 : vector<1x128xf32>
    %25 = arith.mulf %21, %5 : vector<1x128xf32>
    %26 = arith.addf %24, %25 : vector<1x128xf32>
    %27 = arith.cmpf oge, %26, %14 : vector<1x128xf32>
    %28 = arith.extui %27 : vector<1x128xi1> to vector<1x128xi32>
    %29 = arith.sitofp %28 : vector<1x128xi32> to vector<1x128xf32>
    %cst_18 = arith.constant 1.000000e+00 : f32
    %30 = vector.broadcast %cst_18 : f32 to vector<1x128xf32>
    %31 = arith.subf %30, %29 : vector<1x128xf32>
    %32 = arith.subf %26, %14 : vector<1x128xf32>
    %33 = arith.negf %32 : vector<1x128xf32>
    %34 = math.exp %33 : vector<1x128xf32>
    %cst_19 = arith.constant 1.000000e+00 : f32
    %35 = vector.broadcast %cst_19 : f32 to vector<1x128xf32>
    %36 = arith.addf %35, %34 : vector<1x128xf32>
    %37 = arith.divf %35, %36 : vector<1x128xf32>
    %38 = arith.mulf %13, %6 : vector<1x128xf32>
    %39 = arith.subf %13, %38 : vector<1x128xf32>
    %40 = arith.mulf %31, %39 : vector<1x128xf32>
    %41 = arith.addf %29, %40 : vector<1x128xf32>
    %42 = arith.mulf %7, %14 : vector<1x128xf32>
    %43 = arith.mulf %29, %8 : vector<1x128xf32>
    %44 = arith.addf %42, %43 : vector<1x128xf32>
    %45 = arith.subf %12, %3 : vector<1x128xf32>
    %46 = arith.mulf %9, %45 : vector<1x128xf32>
    %47 = arith.addf %3, %46 : vector<1x128xf32>
    %48 = arith.subf %47, %10 : vector<1x128xf32>
    %49 = arith.mulf %29, %48 : vector<1x128xf32>
    %50 = arith.mulf %31, %26 : vector<1x128xf32>
    %51 = arith.addf %49, %50 : vector<1x128xf32>
    %c0_20 = arith.constant 0 : index
    %c0_21 = arith.constant 0 : index
    %52 = vector.load %arg4[%c0_20, %c0_21] : memref<16x128xf32, #tpu.memory_space<vmem>>, vector<1x128xf32>
    tpu.vector_store %arg4[%c0_20, %c0_21], %51 {strides = array<i32>} : memref<16x128xf32, #tpu.memory_space<vmem>>, vector<1x128xf32>,
    %c0_22 = arith.constant 0 : index
    %c0_23 = arith.constant 0 : index
    %53 = vector.load %arg5[%c0_22, %c0_23] : memref<16x128xf32, #tpu.memory_space<vmem>>, vector<1x128xf32>
    tpu.vector_store %arg5[%c0_22, %c0_23], %37 {strides = array<i32>} : memref<16x128xf32, #tpu.memory_space<vmem>>, vector<1x128xf32>,
    %cst_24 = arith.constant dense<0.000000e+00> : vector<1x128xf32>
    %54 = tpu.matmul %41, %11, %cst_24 {dimension_numbers = #tpu.dot_dimension_numbers<[1], [0], [0], [1], [0, 0, 1, 1], [], []>} : vector<1x128xf32>, vector<128x128xf32>, vector<1x128xf32> -> vector<1x128xf32>
    %c1_i32 = arith.constant 1 : i32
    %55 = arith.addi %15, %c1_i32 : i32
    %56 = arith.index_cast %55 : i32 to index
    %57 = memref.load %arg3[%56] : memref<64xf32, #tpu.memory_space<smem>>
    %58 = vector.broadcast %57 : f32 to vector<1x128xf32>
    %59 = arith.addf %54, %58 : vector<1x128xf32>
    %60 = arith.subf %3, %51 : vector<1x128xf32>
    %61 = arith.mulf %4, %60 : vector<1x128xf32>
    %62 = arith.addf %51, %61 : vector<1x128xf32>
    %63 = arith.mulf %59, %5 : vector<1x128xf32>
    %64 = arith.addf %62, %63 : vector<1x128xf32>
    %65 = arith.cmpf oge, %64, %44 : vector<1x128xf32>
    %66 = arith.extui %65 : vector<1x128xi1> to vector<1x128xi32>
    %67 = arith.sitofp %66 : vector<1x128xi32> to vector<1x128xf32>
    %cst_25 = arith.constant 1.000000e+00 : f32
    %68 = vector.broadcast %cst_25 : f32 to vector<1x128xf32>
    %69 = arith.subf %68, %67 : vector<1x128xf32>
    %70 = arith.subf %64, %44 : vector<1x128xf32>
    %71 = arith.negf %70 : vector<1x128xf32>
    %72 = math.exp %71 : vector<1x128xf32>
    %cst_26 = arith.constant 1.000000e+00 : f32
    %73 = vector.broadcast %cst_26 : f32 to vector<1x128xf32>
    %74 = arith.addf %73, %72 : vector<1x128xf32>
    %75 = arith.divf %73, %74 : vector<1x128xf32>
    %76 = arith.mulf %41, %6 : vector<1x128xf32>
    %77 = arith.subf %41, %76 : vector<1x128xf32>
    %78 = arith.mulf %69, %77 : vector<1x128xf32>
    %79 = arith.addf %67, %78 : vector<1x128xf32>
    %80 = arith.mulf %7, %44 : vector<1x128xf32>
    %81 = arith.mulf %67, %8 : vector<1x128xf32>
    %82 = arith.addf %80, %81 : vector<1x128xf32>
    %83 = arith.subf %51, %3 : vector<1x128xf32>
    %84 = arith.mulf %9, %83 : vector<1x128xf32>
    %85 = arith.addf %3, %84 : vector<1x128xf32>
    %86 = arith.subf %85, %10 : vector<1x128xf32>
    %87 = arith.mulf %67, %86 : vector<1x128xf32>
    %88 = arith.mulf %69, %64 : vector<1x128xf32>
    %89 = arith.addf %87, %88 : vector<1x128xf32>
    %c1_27 = arith.constant 1 : index
    %c0_28 = arith.constant 0 : index
    %90 = vector.load %arg4[%c1_27, %c0_28] : memref<16x128xf32, #tpu.memory_space<vmem>>, vector<1x128xf32>
    tpu.vector_store %arg4[%c1_27, %c0_28], %89 {strides = array<i32>} : memref<16x128xf32, #tpu.memory_space<vmem>>, vector<1x128xf32>,
    %c1_29 = arith.constant 1 : index
    %c0_30 = arith.constant 0 : index
    %91 = vector.load %arg5[%c1_29, %c0_30] : memref<16x128xf32, #tpu.memory_space<vmem>>, vector<1x128xf32>
    tpu.vector_store %arg5[%c1_29, %c0_30], %75 {strides = array<i32>} : memref<16x128xf32, #tpu.memory_space<vmem>>, vector<1x128xf32>,
    %cst_31 = arith.constant dense<0.000000e+00> : vector<1x128xf32>
    %92 = tpu.matmul %79, %11, %cst_31 {dimension_numbers = #tpu.dot_dimension_numbers<[1], [0], [0], [1], [0, 0, 1, 1], [], []>} : vector<1x128xf32>, vector<128x128xf32>, vector<1x128xf32> -> vector<1x128xf32>
    %c2_i32 = arith.constant 2 : i32
    %93 = arith.addi %15, %c2_i32 : i32
    %94 = arith.index_cast %93 : i32 to index
    %95 = memref.load %arg3[%94] : memref<64xf32, #tpu.memory_space<smem>>
    %96 = vector.broadcast %95 : f32 to vector<1x128xf32>
    %97 = arith.addf %92, %96 : vector<1x128xf32>
    %98 = arith.subf %3, %89 : vector<1x128xf32>
    %99 = arith.mulf %4, %98 : vector<1x128xf32>
    %100 = arith.addf %89, %99 : vector<1x128xf32>
    %101 = arith.mulf %97, %5 : vector<1x128xf32>
    %102 = arith.addf %100, %101 : vector<1x128xf32>
    %103 = arith.cmpf oge, %102, %82 : vector<1x128xf32>
    %104 = arith.extui %103 : vector<1x128xi1> to vector<1x128xi32>
    %105 = arith.sitofp %104 : vector<1x128xi32> to vector<1x128xf32>
    %cst_32 = arith.constant 1.000000e+00 : f32
    %106 = vector.broadcast %cst_32 : f32 to vector<1x128xf32>
    %107 = arith.subf %106, %105 : vector<1x128xf32>
    %108 = arith.subf %102, %82 : vector<1x128xf32>
    %109 = arith.negf %108 : vector<1x128xf32>
    %110 = math.exp %109 : vector<1x128xf32>
    %cst_33 = arith.constant 1.000000e+00 : f32
    %111 = vector.broadcast %cst_33 : f32 to vector<1x128xf32>
    %112 = arith.addf %111, %110 : vector<1x128xf32>
    %113 = arith.divf %111, %112 : vector<1x128xf32>
    %114 = arith.mulf %79, %6 : vector<1x128xf32>
    %115 = arith.subf %79, %114 : vector<1x128xf32>
    %116 = arith.mulf %107, %115 : vector<1x128xf32>
    %117 = arith.addf %105, %116 : vector<1x128xf32>
    %118 = arith.mulf %7, %82 : vector<1x128xf32>
    %119 = arith.mulf %105, %8 : vector<1x128xf32>
    %120 = arith.addf %118, %119 : vector<1x128xf32>
    %121 = arith.subf %89, %3 : vector<1x128xf32>
    %122 = arith.mulf %9, %121 : vector<1x128xf32>
    %123 = arith.addf %3, %122 : vector<1x128xf32>
    %124 = arith.subf %123, %10 : vector<1x128xf32>
    %125 = arith.mulf %105, %124 : vector<1x128xf32>
    %126 = arith.mulf %107, %102 : vector<1x128xf32>
    %127 = arith.addf %125, %126 : vector<1x128xf32>
    %c2_34 = arith.constant 2 : index
    %c0_35 = arith.constant 0 : index
    %128 = vector.load %arg4[%c2_34, %c0_35] : memref<16x128xf32, #tpu.memory_space<vmem>>, vector<1x128xf32>
    tpu.vector_store %arg4[%c2_34, %c0_35], %127 {strides = array<i32>} : memref<16x128xf32, #tpu.memory_space<vmem>>, vector<1x128xf32>,
    %c2_36 = arith.constant 2 : index
    %c0_37 = arith.constant 0 : index
    %129 = vector.load %arg5[%c2_36, %c0_37] : memref<16x128xf32, #tpu.memory_space<vmem>>, vector<1x128xf32>
    tpu.vector_store %arg5[%c2_36, %c0_37], %113 {strides = array<i32>} : memref<16x128xf32, #tpu.memory_space<vmem>>, vector<1x128xf32>,
    %cst_38 = arith.constant dense<0.000000e+00> : vector<1x128xf32>
    %130 = tpu.matmul %117, %11, %cst_38 {dimension_numbers = #tpu.dot_dimension_numbers<[1], [0], [0], [1], [0, 0, 1, 1], [], []>} : vector<1x128xf32>, vector<128x128xf32>, vector<1x128xf32> -> vector<1x128xf32>
    %c3_i32 = arith.constant 3 : i32
    %131 = arith.addi %15, %c3_i32 : i32
    %132 = arith.index_cast %131 : i32 to index
    %133 = memref.load %arg3[%132] : memref<64xf32, #tpu.memory_space<smem>>
    %134 = vector.broadcast %133 : f32 to vector<1x128xf32>
    %135 = arith.addf %130, %134 : vector<1x128xf32>
    %136 = arith.subf %3, %127 : vector<1x128xf32>
    %137 = arith.mulf %4, %136 : vector<1x128xf32>
    %138 = arith.addf %127, %137 : vector<1x128xf32>
    %139 = arith.mulf %135, %5 : vector<1x128xf32>
    %140 = arith.addf %138, %139 : vector<1x128xf32>
    %141 = arith.cmpf oge, %140, %120 : vector<1x128xf32>
    %142 = arith.extui %141 : vector<1x128xi1> to vector<1x128xi32>
    %143 = arith.sitofp %142 : vector<1x128xi32> to vector<1x128xf32>
    %cst_39 = arith.constant 1.000000e+00 : f32
    %144 = vector.broadcast %cst_39 : f32 to vector<1x128xf32>
    %145 = arith.subf %144, %143 : vector<1x128xf32>
    %146 = arith.subf %140, %120 : vector<1x128xf32>
    %147 = arith.negf %146 : vector<1x128xf32>
    %148 = math.exp %147 : vector<1x128xf32>
    %cst_40 = arith.constant 1.000000e+00 : f32
    %149 = vector.broadcast %cst_40 : f32 to vector<1x128xf32>
    %150 = arith.addf %149, %148 : vector<1x128xf32>
    %151 = arith.divf %149, %150 : vector<1x128xf32>
    %152 = arith.mulf %117, %6 : vector<1x128xf32>
    %153 = arith.subf %117, %152 : vector<1x128xf32>
    %154 = arith.mulf %145, %153 : vector<1x128xf32>
    %155 = arith.addf %143, %154 : vector<1x128xf32>
    %156 = arith.mulf %7, %120 : vector<1x128xf32>
    %157 = arith.mulf %143, %8 : vector<1x128xf32>
    %158 = arith.addf %156, %157 : vector<1x128xf32>
    %159 = arith.subf %127, %3 : vector<1x128xf32>
    %160 = arith.mulf %9, %159 : vector<1x128xf32>
    %161 = arith.addf %3, %160 : vector<1x128xf32>
    %162 = arith.subf %161, %10 : vector<1x128xf32>
    %163 = arith.mulf %143, %162 : vector<1x128xf32>
    %164 = arith.mulf %145, %140 : vector<1x128xf32>
    %165 = arith.addf %163, %164 : vector<1x128xf32>
    %c3_41 = arith.constant 3 : index
    %c0_42 = arith.constant 0 : index
    %166 = vector.load %arg4[%c3_41, %c0_42] : memref<16x128xf32, #tpu.memory_space<vmem>>, vector<1x128xf32>
    tpu.vector_store %arg4[%c3_41, %c0_42], %165 {strides = array<i32>} : memref<16x128xf32, #tpu.memory_space<vmem>>, vector<1x128xf32>,
    %c3_43 = arith.constant 3 : index
    %c0_44 = arith.constant 0 : index
    %167 = vector.load %arg5[%c3_43, %c0_44] : memref<16x128xf32, #tpu.memory_space<vmem>>, vector<1x128xf32>
    tpu.vector_store %arg5[%c3_43, %c0_44], %151 {strides = array<i32>} : memref<16x128xf32, #tpu.memory_space<vmem>>, vector<1x128xf32>,
    %cst_45 = arith.constant dense<0.000000e+00> : vector<1x128xf32>
    %168 = tpu.matmul %155, %11, %cst_45 {dimension_numbers = #tpu.dot_dimension_numbers<[1], [0], [0], [1], [0, 0, 1, 1], [], []>} : vector<1x128xf32>, vector<128x128xf32>, vector<1x128xf32> -> vector<1x128xf32>
    %c4_i32 = arith.constant 4 : i32
    %169 = arith.addi %15, %c4_i32 : i32
    %170 = arith.index_cast %169 : i32 to index
    %171 = memref.load %arg3[%170] : memref<64xf32, #tpu.memory_space<smem>>
    %172 = vector.broadcast %171 : f32 to vector<1x128xf32>
    %173 = arith.addf %168, %172 : vector<1x128xf32>
    %174 = arith.subf %3, %165 : vector<1x128xf32>
    %175 = arith.mulf %4, %174 : vector<1x128xf32>
    %176 = arith.addf %165, %175 : vector<1x128xf32>
    %177 = arith.mulf %173, %5 : vector<1x128xf32>
    %178 = arith.addf %176, %177 : vector<1x128xf32>
    %179 = arith.cmpf oge, %178, %158 : vector<1x128xf32>
    %180 = arith.extui %179 : vector<1x128xi1> to vector<1x128xi32>
    %181 = arith.sitofp %180 : vector<1x128xi32> to vector<1x128xf32>
    %cst_46 = arith.constant 1.000000e+00 : f32
    %182 = vector.broadcast %cst_46 : f32 to vector<1x128xf32>
    %183 = arith.subf %182, %181 : vector<1x128xf32>
    %184 = arith.subf %178, %158 : vector<1x128xf32>
    %185 = arith.negf %184 : vector<1x128xf32>
    %186 = math.exp %185 : vector<1x128xf32>
    %cst_47 = arith.constant 1.000000e+00 : f32
    %187 = vector.broadcast %cst_47 : f32 to vector<1x128xf32>
    %188 = arith.addf %187, %186 : vector<1x128xf32>
    %189 = arith.divf %187, %188 : vector<1x128xf32>
    %190 = arith.mulf %155, %6 : vector<1x128xf32>
    %191 = arith.subf %155, %190 : vector<1x128xf32>
    %192 = arith.mulf %183, %191 : vector<1x128xf32>
    %193 = arith.addf %181, %192 : vector<1x128xf32>
    %194 = arith.mulf %7, %158 : vector<1x128xf32>
    %195 = arith.mulf %181, %8 : vector<1x128xf32>
    %196 = arith.addf %194, %195 : vector<1x128xf32>
    %197 = arith.subf %165, %3 : vector<1x128xf32>
    %198 = arith.mulf %9, %197 : vector<1x128xf32>
    %199 = arith.addf %3, %198 : vector<1x128xf32>
    %200 = arith.subf %199, %10 : vector<1x128xf32>
    %201 = arith.mulf %181, %200 : vector<1x128xf32>
    %202 = arith.mulf %183, %178 : vector<1x128xf32>
    %203 = arith.addf %201, %202 : vector<1x128xf32>
    %c4_48 = arith.constant 4 : index
    %c0_49 = arith.constant 0 : index
    %204 = vector.load %arg4[%c4_48, %c0_49] : memref<16x128xf32, #tpu.memory_space<vmem>>, vector<1x128xf32>
    tpu.vector_store %arg4[%c4_48, %c0_49], %203 {strides = array<i32>} : memref<16x128xf32, #tpu.memory_space<vmem>>, vector<1x128xf32>,
    %c4_50 = arith.constant 4 : index
    %c0_51 = arith.constant 0 : index
    %205 = vector.load %arg5[%c4_50, %c0_51] : memref<16x128xf32, #tpu.memory_space<vmem>>, vector<1x128xf32>
    tpu.vector_store %arg5[%c4_50, %c0_51], %189 {strides = array<i32>} : memref<16x128xf32, #tpu.memory_space<vmem>>, vector<1x128xf32>,
    %cst_52 = arith.constant dense<0.000000e+00> : vector<1x128xf32>
    %206 = tpu.matmul %193, %11, %cst_52 {dimension_numbers = #tpu.dot_dimension_numbers<[1], [0], [0], [1], [0, 0, 1, 1], [], []>} : vector<1x128xf32>, vector<128x128xf32>, vector<1x128xf32> -> vector<1x128xf32>
    %c5_i32 = arith.constant 5 : i32
    %207 = arith.addi %15, %c5_i32 : i32
    %208 = arith.index_cast %207 : i32 to index
    %209 = memref.load %arg3[%208] : memref<64xf32, #tpu.memory_space<smem>>
    %210 = vector.broadcast %209 : f32 to vector<1x128xf32>
    %211 = arith.addf %206, %210 : vector<1x128xf32>
    %212 = arith.subf %3, %203 : vector<1x128xf32>
    %213 = arith.mulf %4, %212 : vector<1x128xf32>
    %214 = arith.addf %203, %213 : vector<1x128xf32>
    %215 = arith.mulf %211, %5 : vector<1x128xf32>
    %216 = arith.addf %214, %215 : vector<1x128xf32>
    %217 = arith.cmpf oge, %216, %196 : vector<1x128xf32>
    %218 = arith.extui %217 : vector<1x128xi1> to vector<1x128xi32>
    %219 = arith.sitofp %218 : vector<1x128xi32> to vector<1x128xf32>
    %cst_53 = arith.constant 1.000000e+00 : f32
    %220 = vector.broadcast %cst_53 : f32 to vector<1x128xf32>
    %221 = arith.subf %220, %219 : vector<1x128xf32>
    %222 = arith.subf %216, %196 : vector<1x128xf32>
    %223 = arith.negf %222 : vector<1x128xf32>
    %224 = math.exp %223 : vector<1x128xf32>
    %cst_54 = arith.constant 1.000000e+00 : f32
    %225 = vector.broadcast %cst_54 : f32 to vector<1x128xf32>
    %226 = arith.addf %225, %224 : vector<1x128xf32>
    %227 = arith.divf %225, %226 : vector<1x128xf32>
    %228 = arith.mulf %193, %6 : vector<1x128xf32>
    %229 = arith.subf %193, %228 : vector<1x128xf32>
    %230 = arith.mulf %221, %229 : vector<1x128xf32>
    %231 = arith.addf %219, %230 : vector<1x128xf32>
    %232 = arith.mulf %7, %196 : vector<1x128xf32>
    %233 = arith.mulf %219, %8 : vector<1x128xf32>
    %234 = arith.addf %232, %233 : vector<1x128xf32>
    %235 = arith.subf %203, %3 : vector<1x128xf32>
    %236 = arith.mulf %9, %235 : vector<1x128xf32>
    %237 = arith.addf %3, %236 : vector<1x128xf32>
    %238 = arith.subf %237, %10 : vector<1x128xf32>
    %239 = arith.mulf %219, %238 : vector<1x128xf32>
    %240 = arith.mulf %221, %216 : vector<1x128xf32>
    %241 = arith.addf %239, %240 : vector<1x128xf32>
    %c5_55 = arith.constant 5 : index
    %c0_56 = arith.constant 0 : index
    %242 = vector.load %arg4[%c5_55, %c0_56] : memref<16x128xf32, #tpu.memory_space<vmem>>, vector<1x128xf32>
    tpu.vector_store %arg4[%c5_55, %c0_56], %241 {strides = array<i32>} : memref<16x128xf32, #tpu.memory_space<vmem>>, vector<1x128xf32>,
    %c5_57 = arith.constant 5 : index
    %c0_58 = arith.constant 0 : index
    %243 = vector.load %arg5[%c5_57, %c0_58] : memref<16x128xf32, #tpu.memory_space<vmem>>, vector<1x128xf32>
    tpu.vector_store %arg5[%c5_57, %c0_58], %227 {strides = array<i32>} : memref<16x128xf32, #tpu.memory_space<vmem>>, vector<1x128xf32>,
    %cst_59 = arith.constant dense<0.000000e+00> : vector<1x128xf32>
    %244 = tpu.matmul %231, %11, %cst_59 {dimension_numbers = #tpu.dot_dimension_numbers<[1], [0], [0], [1], [0, 0, 1, 1], [], []>} : vector<1x128xf32>, vector<128x128xf32>, vector<1x128xf32> -> vector<1x128xf32>
    %c6_i32 = arith.constant 6 : i32
    %245 = arith.addi %15, %c6_i32 : i32
    %246 = arith.index_cast %245 : i32 to index
    %247 = memref.load %arg3[%246] : memref<64xf32, #tpu.memory_space<smem>>
    %248 = vector.broadcast %247 : f32 to vector<1x128xf32>
    %249 = arith.addf %244, %248 : vector<1x128xf32>
    %250 = arith.subf %3, %241 : vector<1x128xf32>
    %251 = arith.mulf %4, %250 : vector<1x128xf32>
    %252 = arith.addf %241, %251 : vector<1x128xf32>
    %253 = arith.mulf %249, %5 : vector<1x128xf32>
    %254 = arith.addf %252, %253 : vector<1x128xf32>
    %255 = arith.cmpf oge, %254, %234 : vector<1x128xf32>
    %256 = arith.extui %255 : vector<1x128xi1> to vector<1x128xi32>
    %257 = arith.sitofp %256 : vector<1x128xi32> to vector<1x128xf32>
    %cst_60 = arith.constant 1.000000e+00 : f32
    %258 = vector.broadcast %cst_60 : f32 to vector<1x128xf32>
    %259 = arith.subf %258, %257 : vector<1x128xf32>
    %260 = arith.subf %254, %234 : vector<1x128xf32>
    %261 = arith.negf %260 : vector<1x128xf32>
    %262 = math.exp %261 : vector<1x128xf32>
    %cst_61 = arith.constant 1.000000e+00 : f32
    %263 = vector.broadcast %cst_61 : f32 to vector<1x128xf32>
    %264 = arith.addf %263, %262 : vector<1x128xf32>
    %265 = arith.divf %263, %264 : vector<1x128xf32>
    %266 = arith.mulf %231, %6 : vector<1x128xf32>
    %267 = arith.subf %231, %266 : vector<1x128xf32>
    %268 = arith.mulf %259, %267 : vector<1x128xf32>
    %269 = arith.addf %257, %268 : vector<1x128xf32>
    %270 = arith.mulf %7, %234 : vector<1x128xf32>
    %271 = arith.mulf %257, %8 : vector<1x128xf32>
    %272 = arith.addf %270, %271 : vector<1x128xf32>
    %273 = arith.subf %241, %3 : vector<1x128xf32>
    %274 = arith.mulf %9, %273 : vector<1x128xf32>
    %275 = arith.addf %3, %274 : vector<1x128xf32>
    %276 = arith.subf %275, %10 : vector<1x128xf32>
    %277 = arith.mulf %257, %276 : vector<1x128xf32>
    %278 = arith.mulf %259, %254 : vector<1x128xf32>
    %279 = arith.addf %277, %278 : vector<1x128xf32>
    %c6_62 = arith.constant 6 : index
    %c0_63 = arith.constant 0 : index
    %280 = vector.load %arg4[%c6_62, %c0_63] : memref<16x128xf32, #tpu.memory_space<vmem>>, vector<1x128xf32>
    tpu.vector_store %arg4[%c6_62, %c0_63], %279 {strides = array<i32>} : memref<16x128xf32, #tpu.memory_space<vmem>>, vector<1x128xf32>,
    %c6_64 = arith.constant 6 : index
    %c0_65 = arith.constant 0 : index
    %281 = vector.load %arg5[%c6_64, %c0_65] : memref<16x128xf32, #tpu.memory_space<vmem>>, vector<1x128xf32>
    tpu.vector_store %arg5[%c6_64, %c0_65], %265 {strides = array<i32>} : memref<16x128xf32, #tpu.memory_space<vmem>>, vector<1x128xf32>,
    %cst_66 = arith.constant dense<0.000000e+00> : vector<1x128xf32>
    %282 = tpu.matmul %269, %11, %cst_66 {dimension_numbers = #tpu.dot_dimension_numbers<[1], [0], [0], [1], [0, 0, 1, 1], [], []>} : vector<1x128xf32>, vector<128x128xf32>, vector<1x128xf32> -> vector<1x128xf32>
    %c7_i32 = arith.constant 7 : i32
    %283 = arith.addi %15, %c7_i32 : i32
    %284 = arith.index_cast %283 : i32 to index
    %285 = memref.load %arg3[%284] : memref<64xf32, #tpu.memory_space<smem>>
    %286 = vector.broadcast %285 : f32 to vector<1x128xf32>
    %287 = arith.addf %282, %286 : vector<1x128xf32>
    %288 = arith.subf %3, %279 : vector<1x128xf32>
    %289 = arith.mulf %4, %288 : vector<1x128xf32>
    %290 = arith.addf %279, %289 : vector<1x128xf32>
    %291 = arith.mulf %287, %5 : vector<1x128xf32>
    %292 = arith.addf %290, %291 : vector<1x128xf32>
    %293 = arith.cmpf oge, %292, %272 : vector<1x128xf32>
    %294 = arith.extui %293 : vector<1x128xi1> to vector<1x128xi32>
    %295 = arith.sitofp %294 : vector<1x128xi32> to vector<1x128xf32>
    %cst_67 = arith.constant 1.000000e+00 : f32
    %296 = vector.broadcast %cst_67 : f32 to vector<1x128xf32>
    %297 = arith.subf %296, %295 : vector<1x128xf32>
    %298 = arith.subf %292, %272 : vector<1x128xf32>
    %299 = arith.negf %298 : vector<1x128xf32>
    %300 = math.exp %299 : vector<1x128xf32>
    %cst_68 = arith.constant 1.000000e+00 : f32
    %301 = vector.broadcast %cst_68 : f32 to vector<1x128xf32>
    %302 = arith.addf %301, %300 : vector<1x128xf32>
    %303 = arith.divf %301, %302 : vector<1x128xf32>
    %304 = arith.mulf %269, %6 : vector<1x128xf32>
    %305 = arith.subf %269, %304 : vector<1x128xf32>
    %306 = arith.mulf %297, %305 : vector<1x128xf32>
    %307 = arith.addf %295, %306 : vector<1x128xf32>
    %308 = arith.mulf %7, %272 : vector<1x128xf32>
    %309 = arith.mulf %295, %8 : vector<1x128xf32>
    %310 = arith.addf %308, %309 : vector<1x128xf32>
    %311 = arith.subf %279, %3 : vector<1x128xf32>
    %312 = arith.mulf %9, %311 : vector<1x128xf32>
    %313 = arith.addf %3, %312 : vector<1x128xf32>
    %314 = arith.subf %313, %10 : vector<1x128xf32>
    %315 = arith.mulf %295, %314 : vector<1x128xf32>
    %316 = arith.mulf %297, %292 : vector<1x128xf32>
    %317 = arith.addf %315, %316 : vector<1x128xf32>
    %c7_69 = arith.constant 7 : index
    %c0_70 = arith.constant 0 : index
    %318 = vector.load %arg4[%c7_69, %c0_70] : memref<16x128xf32, #tpu.memory_space<vmem>>, vector<1x128xf32>
    tpu.vector_store %arg4[%c7_69, %c0_70], %317 {strides = array<i32>} : memref<16x128xf32, #tpu.memory_space<vmem>>, vector<1x128xf32>,
    %c7_71 = arith.constant 7 : index
    %c0_72 = arith.constant 0 : index
    %319 = vector.load %arg5[%c7_71, %c0_72] : memref<16x128xf32, #tpu.memory_space<vmem>>, vector<1x128xf32>
    tpu.vector_store %arg5[%c7_71, %c0_72], %303 {strides = array<i32>} : memref<16x128xf32, #tpu.memory_space<vmem>>, vector<1x128xf32>,
    %cst_73 = arith.constant dense<0.000000e+00> : vector<1x128xf32>
    %320 = tpu.matmul %307, %11, %cst_73 {dimension_numbers = #tpu.dot_dimension_numbers<[1], [0], [0], [1], [0, 0, 1, 1], [], []>} : vector<1x128xf32>, vector<128x128xf32>, vector<1x128xf32> -> vector<1x128xf32>
    %c8_i32 = arith.constant 8 : i32
    %321 = arith.addi %15, %c8_i32 : i32
    %322 = arith.index_cast %321 : i32 to index
    %323 = memref.load %arg3[%322] : memref<64xf32, #tpu.memory_space<smem>>
    %324 = vector.broadcast %323 : f32 to vector<1x128xf32>
    %325 = arith.addf %320, %324 : vector<1x128xf32>
    %326 = arith.subf %3, %317 : vector<1x128xf32>
    %327 = arith.mulf %4, %326 : vector<1x128xf32>
    %328 = arith.addf %317, %327 : vector<1x128xf32>
    %329 = arith.mulf %325, %5 : vector<1x128xf32>
    %330 = arith.addf %328, %329 : vector<1x128xf32>
    %331 = arith.cmpf oge, %330, %310 : vector<1x128xf32>
    %332 = arith.extui %331 : vector<1x128xi1> to vector<1x128xi32>
    %333 = arith.sitofp %332 : vector<1x128xi32> to vector<1x128xf32>
    %cst_74 = arith.constant 1.000000e+00 : f32
    %334 = vector.broadcast %cst_74 : f32 to vector<1x128xf32>
    %335 = arith.subf %334, %333 : vector<1x128xf32>
    %336 = arith.subf %330, %310 : vector<1x128xf32>
    %337 = arith.negf %336 : vector<1x128xf32>
    %338 = math.exp %337 : vector<1x128xf32>
    %cst_75 = arith.constant 1.000000e+00 : f32
    %339 = vector.broadcast %cst_75 : f32 to vector<1x128xf32>
    %340 = arith.addf %339, %338 : vector<1x128xf32>
    %341 = arith.divf %339, %340 : vector<1x128xf32>
    %342 = arith.mulf %307, %6 : vector<1x128xf32>
    %343 = arith.subf %307, %342 : vector<1x128xf32>
    %344 = arith.mulf %335, %343 : vector<1x128xf32>
    %345 = arith.addf %333, %344 : vector<1x128xf32>
    %346 = arith.mulf %7, %310 : vector<1x128xf32>
    %347 = arith.mulf %333, %8 : vector<1x128xf32>
    %348 = arith.addf %346, %347 : vector<1x128xf32>
    %349 = arith.subf %317, %3 : vector<1x128xf32>
    %350 = arith.mulf %9, %349 : vector<1x128xf32>
    %351 = arith.addf %3, %350 : vector<1x128xf32>
    %352 = arith.subf %351, %10 : vector<1x128xf32>
    %353 = arith.mulf %333, %352 : vector<1x128xf32>
    %354 = arith.mulf %335, %330 : vector<1x128xf32>
    %355 = arith.addf %353, %354 : vector<1x128xf32>
    %c8 = arith.constant 8 : index
    %c0_76 = arith.constant 0 : index
    %356 = vector.load %arg4[%c8, %c0_76] : memref<16x128xf32, #tpu.memory_space<vmem>>, vector<1x128xf32>
    tpu.vector_store %arg4[%c8, %c0_76], %355 {strides = array<i32>} : memref<16x128xf32, #tpu.memory_space<vmem>>, vector<1x128xf32>,
    %c8_77 = arith.constant 8 : index
    %c0_78 = arith.constant 0 : index
    %357 = vector.load %arg5[%c8_77, %c0_78] : memref<16x128xf32, #tpu.memory_space<vmem>>, vector<1x128xf32>
    tpu.vector_store %arg5[%c8_77, %c0_78], %341 {strides = array<i32>} : memref<16x128xf32, #tpu.memory_space<vmem>>, vector<1x128xf32>,
    %cst_79 = arith.constant dense<0.000000e+00> : vector<1x128xf32>
    %358 = tpu.matmul %345, %11, %cst_79 {dimension_numbers = #tpu.dot_dimension_numbers<[1], [0], [0], [1], [0, 0, 1, 1], [], []>} : vector<1x128xf32>, vector<128x128xf32>, vector<1x128xf32> -> vector<1x128xf32>
    %c9_i32 = arith.constant 9 : i32
    %359 = arith.addi %15, %c9_i32 : i32
    %360 = arith.index_cast %359 : i32 to index
    %361 = memref.load %arg3[%360] : memref<64xf32, #tpu.memory_space<smem>>
    %362 = vector.broadcast %361 : f32 to vector<1x128xf32>
    %363 = arith.addf %358, %362 : vector<1x128xf32>
    %364 = arith.subf %3, %355 : vector<1x128xf32>
    %365 = arith.mulf %4, %364 : vector<1x128xf32>
    %366 = arith.addf %355, %365 : vector<1x128xf32>
    %367 = arith.mulf %363, %5 : vector<1x128xf32>
    %368 = arith.addf %366, %367 : vector<1x128xf32>
    %369 = arith.cmpf oge, %368, %348 : vector<1x128xf32>
    %370 = arith.extui %369 : vector<1x128xi1> to vector<1x128xi32>
    %371 = arith.sitofp %370 : vector<1x128xi32> to vector<1x128xf32>
    %cst_80 = arith.constant 1.000000e+00 : f32
    %372 = vector.broadcast %cst_80 : f32 to vector<1x128xf32>
    %373 = arith.subf %372, %371 : vector<1x128xf32>
    %374 = arith.subf %368, %348 : vector<1x128xf32>
    %375 = arith.negf %374 : vector<1x128xf32>
    %376 = math.exp %375 : vector<1x128xf32>
    %cst_81 = arith.constant 1.000000e+00 : f32
    %377 = vector.broadcast %cst_81 : f32 to vector<1x128xf32>
    %378 = arith.addf %377, %376 : vector<1x128xf32>
    %379 = arith.divf %377, %378 : vector<1x128xf32>
    %380 = arith.mulf %345, %6 : vector<1x128xf32>
    %381 = arith.subf %345, %380 : vector<1x128xf32>
    %382 = arith.mulf %373, %381 : vector<1x128xf32>
    %383 = arith.addf %371, %382 : vector<1x128xf32>
    %384 = arith.mulf %7, %348 : vector<1x128xf32>
    %385 = arith.mulf %371, %8 : vector<1x128xf32>
    %386 = arith.addf %384, %385 : vector<1x128xf32>
    %387 = arith.subf %355, %3 : vector<1x128xf32>
    %388 = arith.mulf %9, %387 : vector<1x128xf32>
    %389 = arith.addf %3, %388 : vector<1x128xf32>
    %390 = arith.subf %389, %10 : vector<1x128xf32>
    %391 = arith.mulf %371, %390 : vector<1x128xf32>
    %392 = arith.mulf %373, %368 : vector<1x128xf32>
    %393 = arith.addf %391, %392 : vector<1x128xf32>
    %c9 = arith.constant 9 : index
    %c0_82 = arith.constant 0 : index
    %394 = vector.load %arg4[%c9, %c0_82] : memref<16x128xf32, #tpu.memory_space<vmem>>, vector<1x128xf32>
    tpu.vector_store %arg4[%c9, %c0_82], %393 {strides = array<i32>} : memref<16x128xf32, #tpu.memory_space<vmem>>, vector<1x128xf32>,
    %c9_83 = arith.constant 9 : index
    %c0_84 = arith.constant 0 : index
    %395 = vector.load %arg5[%c9_83, %c0_84] : memref<16x128xf32, #tpu.memory_space<vmem>>, vector<1x128xf32>
    tpu.vector_store %arg5[%c9_83, %c0_84], %379 {strides = array<i32>} : memref<16x128xf32, #tpu.memory_space<vmem>>, vector<1x128xf32>,
    %cst_85 = arith.constant dense<0.000000e+00> : vector<1x128xf32>
    %396 = tpu.matmul %383, %11, %cst_85 {dimension_numbers = #tpu.dot_dimension_numbers<[1], [0], [0], [1], [0, 0, 1, 1], [], []>} : vector<1x128xf32>, vector<128x128xf32>, vector<1x128xf32> -> vector<1x128xf32>
    %c10_i32 = arith.constant 10 : i32
    %397 = arith.addi %15, %c10_i32 : i32
    %398 = arith.index_cast %397 : i32 to index
    %399 = memref.load %arg3[%398] : memref<64xf32, #tpu.memory_space<smem>>
    %400 = vector.broadcast %399 : f32 to vector<1x128xf32>
    %401 = arith.addf %396, %400 : vector<1x128xf32>
    %402 = arith.subf %3, %393 : vector<1x128xf32>
    %403 = arith.mulf %4, %402 : vector<1x128xf32>
    %404 = arith.addf %393, %403 : vector<1x128xf32>
    %405 = arith.mulf %401, %5 : vector<1x128xf32>
    %406 = arith.addf %404, %405 : vector<1x128xf32>
    %407 = arith.cmpf oge, %406, %386 : vector<1x128xf32>
    %408 = arith.extui %407 : vector<1x128xi1> to vector<1x128xi32>
    %409 = arith.sitofp %408 : vector<1x128xi32> to vector<1x128xf32>
    %cst_86 = arith.constant 1.000000e+00 : f32
    %410 = vector.broadcast %cst_86 : f32 to vector<1x128xf32>
    %411 = arith.subf %410, %409 : vector<1x128xf32>
    %412 = arith.subf %406, %386 : vector<1x128xf32>
    %413 = arith.negf %412 : vector<1x128xf32>
    %414 = math.exp %413 : vector<1x128xf32>
    %cst_87 = arith.constant 1.000000e+00 : f32
    %415 = vector.broadcast %cst_87 : f32 to vector<1x128xf32>
    %416 = arith.addf %415, %414 : vector<1x128xf32>
    %417 = arith.divf %415, %416 : vector<1x128xf32>
    %418 = arith.mulf %383, %6 : vector<1x128xf32>
    %419 = arith.subf %383, %418 : vector<1x128xf32>
    %420 = arith.mulf %411, %419 : vector<1x128xf32>
    %421 = arith.addf %409, %420 : vector<1x128xf32>
    %422 = arith.mulf %7, %386 : vector<1x128xf32>
    %423 = arith.mulf %409, %8 : vector<1x128xf32>
    %424 = arith.addf %422, %423 : vector<1x128xf32>
    %425 = arith.subf %393, %3 : vector<1x128xf32>
    %426 = arith.mulf %9, %425 : vector<1x128xf32>
    %427 = arith.addf %3, %426 : vector<1x128xf32>
    %428 = arith.subf %427, %10 : vector<1x128xf32>
    %429 = arith.mulf %409, %428 : vector<1x128xf32>
    %430 = arith.mulf %411, %406 : vector<1x128xf32>
    %431 = arith.addf %429, %430 : vector<1x128xf32>
    %c10 = arith.constant 10 : index
    %c0_88 = arith.constant 0 : index
    %432 = vector.load %arg4[%c10, %c0_88] : memref<16x128xf32, #tpu.memory_space<vmem>>, vector<1x128xf32>
    tpu.vector_store %arg4[%c10, %c0_88], %431 {strides = array<i32>} : memref<16x128xf32, #tpu.memory_space<vmem>>, vector<1x128xf32>,
    %c10_89 = arith.constant 10 : index
    %c0_90 = arith.constant 0 : index
    %433 = vector.load %arg5[%c10_89, %c0_90] : memref<16x128xf32, #tpu.memory_space<vmem>>, vector<1x128xf32>
    tpu.vector_store %arg5[%c10_89, %c0_90], %417 {strides = array<i32>} : memref<16x128xf32, #tpu.memory_space<vmem>>, vector<1x128xf32>,
    %cst_91 = arith.constant dense<0.000000e+00> : vector<1x128xf32>
    %434 = tpu.matmul %421, %11, %cst_91 {dimension_numbers = #tpu.dot_dimension_numbers<[1], [0], [0], [1], [0, 0, 1, 1], [], []>} : vector<1x128xf32>, vector<128x128xf32>, vector<1x128xf32> -> vector<1x128xf32>
    %c11_i32 = arith.constant 11 : i32
    %435 = arith.addi %15, %c11_i32 : i32
    %436 = arith.index_cast %435 : i32 to index
    %437 = memref.load %arg3[%436] : memref<64xf32, #tpu.memory_space<smem>>
    %438 = vector.broadcast %437 : f32 to vector<1x128xf32>
    %439 = arith.addf %434, %438 : vector<1x128xf32>
    %440 = arith.subf %3, %431 : vector<1x128xf32>
    %441 = arith.mulf %4, %440 : vector<1x128xf32>
    %442 = arith.addf %431, %441 : vector<1x128xf32>
    %443 = arith.mulf %439, %5 : vector<1x128xf32>
    %444 = arith.addf %442, %443 : vector<1x128xf32>
    %445 = arith.cmpf oge, %444, %424 : vector<1x128xf32>
    %446 = arith.extui %445 : vector<1x128xi1> to vector<1x128xi32>
    %447 = arith.sitofp %446 : vector<1x128xi32> to vector<1x128xf32>
    %cst_92 = arith.constant 1.000000e+00 : f32
    %448 = vector.broadcast %cst_92 : f32 to vector<1x128xf32>
    %449 = arith.subf %448, %447 : vector<1x128xf32>
    %450 = arith.subf %444, %424 : vector<1x128xf32>
    %451 = arith.negf %450 : vector<1x128xf32>
    %452 = math.exp %451 : vector<1x128xf32>
    %cst_93 = arith.constant 1.000000e+00 : f32
    %453 = vector.broadcast %cst_93 : f32 to vector<1x128xf32>
    %454 = arith.addf %453, %452 : vector<1x128xf32>
    %455 = arith.divf %453, %454 : vector<1x128xf32>
    %456 = arith.mulf %421, %6 : vector<1x128xf32>
    %457 = arith.subf %421, %456 : vector<1x128xf32>
    %458 = arith.mulf %449, %457 : vector<1x128xf32>
    %459 = arith.addf %447, %458 : vector<1x128xf32>
    %460 = arith.mulf %7, %424 : vector<1x128xf32>
    %461 = arith.mulf %447, %8 : vector<1x128xf32>
    %462 = arith.addf %460, %461 : vector<1x128xf32>
    %463 = arith.subf %431, %3 : vector<1x128xf32>
    %464 = arith.mulf %9, %463 : vector<1x128xf32>
    %465 = arith.addf %3, %464 : vector<1x128xf32>
    %466 = arith.subf %465, %10 : vector<1x128xf32>
    %467 = arith.mulf %447, %466 : vector<1x128xf32>
    %468 = arith.mulf %449, %444 : vector<1x128xf32>
    %469 = arith.addf %467, %468 : vector<1x128xf32>
    %c11 = arith.constant 11 : index
    %c0_94 = arith.constant 0 : index
    %470 = vector.load %arg4[%c11, %c0_94] : memref<16x128xf32, #tpu.memory_space<vmem>>, vector<1x128xf32>
    tpu.vector_store %arg4[%c11, %c0_94], %469 {strides = array<i32>} : memref<16x128xf32, #tpu.memory_space<vmem>>, vector<1x128xf32>,
    %c11_95 = arith.constant 11 : index
    %c0_96 = arith.constant 0 : index
    %471 = vector.load %arg5[%c11_95, %c0_96] : memref<16x128xf32, #tpu.memory_space<vmem>>, vector<1x128xf32>
    tpu.vector_store %arg5[%c11_95, %c0_96], %455 {strides = array<i32>} : memref<16x128xf32, #tpu.memory_space<vmem>>, vector<1x128xf32>,
    %cst_97 = arith.constant dense<0.000000e+00> : vector<1x128xf32>
    %472 = tpu.matmul %459, %11, %cst_97 {dimension_numbers = #tpu.dot_dimension_numbers<[1], [0], [0], [1], [0, 0, 1, 1], [], []>} : vector<1x128xf32>, vector<128x128xf32>, vector<1x128xf32> -> vector<1x128xf32>
    %c12_i32 = arith.constant 12 : i32
    %473 = arith.addi %15, %c12_i32 : i32
    %474 = arith.index_cast %473 : i32 to index
    %475 = memref.load %arg3[%474] : memref<64xf32, #tpu.memory_space<smem>>
    %476 = vector.broadcast %475 : f32 to vector<1x128xf32>
    %477 = arith.addf %472, %476 : vector<1x128xf32>
    %478 = arith.subf %3, %469 : vector<1x128xf32>
    %479 = arith.mulf %4, %478 : vector<1x128xf32>
    %480 = arith.addf %469, %479 : vector<1x128xf32>
    %481 = arith.mulf %477, %5 : vector<1x128xf32>
    %482 = arith.addf %480, %481 : vector<1x128xf32>
    %483 = arith.cmpf oge, %482, %462 : vector<1x128xf32>
    %484 = arith.extui %483 : vector<1x128xi1> to vector<1x128xi32>
    %485 = arith.sitofp %484 : vector<1x128xi32> to vector<1x128xf32>
    %cst_98 = arith.constant 1.000000e+00 : f32
    %486 = vector.broadcast %cst_98 : f32 to vector<1x128xf32>
    %487 = arith.subf %486, %485 : vector<1x128xf32>
    %488 = arith.subf %482, %462 : vector<1x128xf32>
    %489 = arith.negf %488 : vector<1x128xf32>
    %490 = math.exp %489 : vector<1x128xf32>
    %cst_99 = arith.constant 1.000000e+00 : f32
    %491 = vector.broadcast %cst_99 : f32 to vector<1x128xf32>
    %492 = arith.addf %491, %490 : vector<1x128xf32>
    %493 = arith.divf %491, %492 : vector<1x128xf32>
    %494 = arith.mulf %459, %6 : vector<1x128xf32>
    %495 = arith.subf %459, %494 : vector<1x128xf32>
    %496 = arith.mulf %487, %495 : vector<1x128xf32>
    %497 = arith.addf %485, %496 : vector<1x128xf32>
    %498 = arith.mulf %7, %462 : vector<1x128xf32>
    %499 = arith.mulf %485, %8 : vector<1x128xf32>
    %500 = arith.addf %498, %499 : vector<1x128xf32>
    %501 = arith.subf %469, %3 : vector<1x128xf32>
    %502 = arith.mulf %9, %501 : vector<1x128xf32>
    %503 = arith.addf %3, %502 : vector<1x128xf32>
    %504 = arith.subf %503, %10 : vector<1x128xf32>
    %505 = arith.mulf %485, %504 : vector<1x128xf32>
    %506 = arith.mulf %487, %482 : vector<1x128xf32>
    %507 = arith.addf %505, %506 : vector<1x128xf32>
    %c12 = arith.constant 12 : index
    %c0_100 = arith.constant 0 : index
    %508 = vector.load %arg4[%c12, %c0_100] : memref<16x128xf32, #tpu.memory_space<vmem>>, vector<1x128xf32>
    tpu.vector_store %arg4[%c12, %c0_100], %507 {strides = array<i32>} : memref<16x128xf32, #tpu.memory_space<vmem>>, vector<1x128xf32>,
    %c12_101 = arith.constant 12 : index
    %c0_102 = arith.constant 0 : index
    %509 = vector.load %arg5[%c12_101, %c0_102] : memref<16x128xf32, #tpu.memory_space<vmem>>, vector<1x128xf32>
    tpu.vector_store %arg5[%c12_101, %c0_102], %493 {strides = array<i32>} : memref<16x128xf32, #tpu.memory_space<vmem>>, vector<1x128xf32>,
    %cst_103 = arith.constant dense<0.000000e+00> : vector<1x128xf32>
    %510 = tpu.matmul %497, %11, %cst_103 {dimension_numbers = #tpu.dot_dimension_numbers<[1], [0], [0], [1], [0, 0, 1, 1], [], []>} : vector<1x128xf32>, vector<128x128xf32>, vector<1x128xf32> -> vector<1x128xf32>
    %c13_i32 = arith.constant 13 : i32
    %511 = arith.addi %15, %c13_i32 : i32
    %512 = arith.index_cast %511 : i32 to index
    %513 = memref.load %arg3[%512] : memref<64xf32, #tpu.memory_space<smem>>
    %514 = vector.broadcast %513 : f32 to vector<1x128xf32>
    %515 = arith.addf %510, %514 : vector<1x128xf32>
    %516 = arith.subf %3, %507 : vector<1x128xf32>
    %517 = arith.mulf %4, %516 : vector<1x128xf32>
    %518 = arith.addf %507, %517 : vector<1x128xf32>
    %519 = arith.mulf %515, %5 : vector<1x128xf32>
    %520 = arith.addf %518, %519 : vector<1x128xf32>
    %521 = arith.cmpf oge, %520, %500 : vector<1x128xf32>
    %522 = arith.extui %521 : vector<1x128xi1> to vector<1x128xi32>
    %523 = arith.sitofp %522 : vector<1x128xi32> to vector<1x128xf32>
    %cst_104 = arith.constant 1.000000e+00 : f32
    %524 = vector.broadcast %cst_104 : f32 to vector<1x128xf32>
    %525 = arith.subf %524, %523 : vector<1x128xf32>
    %526 = arith.subf %520, %500 : vector<1x128xf32>
    %527 = arith.negf %526 : vector<1x128xf32>
    %528 = math.exp %527 : vector<1x128xf32>
    %cst_105 = arith.constant 1.000000e+00 : f32
    %529 = vector.broadcast %cst_105 : f32 to vector<1x128xf32>
    %530 = arith.addf %529, %528 : vector<1x128xf32>
    %531 = arith.divf %529, %530 : vector<1x128xf32>
    %532 = arith.mulf %497, %6 : vector<1x128xf32>
    %533 = arith.subf %497, %532 : vector<1x128xf32>
    %534 = arith.mulf %525, %533 : vector<1x128xf32>
    %535 = arith.addf %523, %534 : vector<1x128xf32>
    %536 = arith.mulf %7, %500 : vector<1x128xf32>
    %537 = arith.mulf %523, %8 : vector<1x128xf32>
    %538 = arith.addf %536, %537 : vector<1x128xf32>
    %539 = arith.subf %507, %3 : vector<1x128xf32>
    %540 = arith.mulf %9, %539 : vector<1x128xf32>
    %541 = arith.addf %3, %540 : vector<1x128xf32>
    %542 = arith.subf %541, %10 : vector<1x128xf32>
    %543 = arith.mulf %523, %542 : vector<1x128xf32>
    %544 = arith.mulf %525, %520 : vector<1x128xf32>
    %545 = arith.addf %543, %544 : vector<1x128xf32>
    %c13 = arith.constant 13 : index
    %c0_106 = arith.constant 0 : index
    %546 = vector.load %arg4[%c13, %c0_106] : memref<16x128xf32, #tpu.memory_space<vmem>>, vector<1x128xf32>
    tpu.vector_store %arg4[%c13, %c0_106], %545 {strides = array<i32>} : memref<16x128xf32, #tpu.memory_space<vmem>>, vector<1x128xf32>,
    %c13_107 = arith.constant 13 : index
    %c0_108 = arith.constant 0 : index
    %547 = vector.load %arg5[%c13_107, %c0_108] : memref<16x128xf32, #tpu.memory_space<vmem>>, vector<1x128xf32>
    tpu.vector_store %arg5[%c13_107, %c0_108], %531 {strides = array<i32>} : memref<16x128xf32, #tpu.memory_space<vmem>>, vector<1x128xf32>,
    %cst_109 = arith.constant dense<0.000000e+00> : vector<1x128xf32>
    %548 = tpu.matmul %535, %11, %cst_109 {dimension_numbers = #tpu.dot_dimension_numbers<[1], [0], [0], [1], [0, 0, 1, 1], [], []>} : vector<1x128xf32>, vector<128x128xf32>, vector<1x128xf32> -> vector<1x128xf32>
    %c14_i32 = arith.constant 14 : i32
    %549 = arith.addi %15, %c14_i32 : i32
    %550 = arith.index_cast %549 : i32 to index
    %551 = memref.load %arg3[%550] : memref<64xf32, #tpu.memory_space<smem>>
    %552 = vector.broadcast %551 : f32 to vector<1x128xf32>
    %553 = arith.addf %548, %552 : vector<1x128xf32>
    %554 = arith.subf %3, %545 : vector<1x128xf32>
    %555 = arith.mulf %4, %554 : vector<1x128xf32>
    %556 = arith.addf %545, %555 : vector<1x128xf32>
    %557 = arith.mulf %553, %5 : vector<1x128xf32>
    %558 = arith.addf %556, %557 : vector<1x128xf32>
    %559 = arith.cmpf oge, %558, %538 : vector<1x128xf32>
    %560 = arith.extui %559 : vector<1x128xi1> to vector<1x128xi32>
    %561 = arith.sitofp %560 : vector<1x128xi32> to vector<1x128xf32>
    %cst_110 = arith.constant 1.000000e+00 : f32
    %562 = vector.broadcast %cst_110 : f32 to vector<1x128xf32>
    %563 = arith.subf %562, %561 : vector<1x128xf32>
    %564 = arith.subf %558, %538 : vector<1x128xf32>
    %565 = arith.negf %564 : vector<1x128xf32>
    %566 = math.exp %565 : vector<1x128xf32>
    %cst_111 = arith.constant 1.000000e+00 : f32
    %567 = vector.broadcast %cst_111 : f32 to vector<1x128xf32>
    %568 = arith.addf %567, %566 : vector<1x128xf32>
    %569 = arith.divf %567, %568 : vector<1x128xf32>
    %570 = arith.mulf %535, %6 : vector<1x128xf32>
    %571 = arith.subf %535, %570 : vector<1x128xf32>
    %572 = arith.mulf %563, %571 : vector<1x128xf32>
    %573 = arith.addf %561, %572 : vector<1x128xf32>
    %574 = arith.mulf %7, %538 : vector<1x128xf32>
    %575 = arith.mulf %561, %8 : vector<1x128xf32>
    %576 = arith.addf %574, %575 : vector<1x128xf32>
    %577 = arith.subf %545, %3 : vector<1x128xf32>
    %578 = arith.mulf %9, %577 : vector<1x128xf32>
    %579 = arith.addf %3, %578 : vector<1x128xf32>
    %580 = arith.subf %579, %10 : vector<1x128xf32>
    %581 = arith.mulf %561, %580 : vector<1x128xf32>
    %582 = arith.mulf %563, %558 : vector<1x128xf32>
    %583 = arith.addf %581, %582 : vector<1x128xf32>
    %c14 = arith.constant 14 : index
    %c0_112 = arith.constant 0 : index
    %584 = vector.load %arg4[%c14, %c0_112] : memref<16x128xf32, #tpu.memory_space<vmem>>, vector<1x128xf32>
    tpu.vector_store %arg4[%c14, %c0_112], %583 {strides = array<i32>} : memref<16x128xf32, #tpu.memory_space<vmem>>, vector<1x128xf32>,
    %c14_113 = arith.constant 14 : index
    %c0_114 = arith.constant 0 : index
    %585 = vector.load %arg5[%c14_113, %c0_114] : memref<16x128xf32, #tpu.memory_space<vmem>>, vector<1x128xf32>
    tpu.vector_store %arg5[%c14_113, %c0_114], %569 {strides = array<i32>} : memref<16x128xf32, #tpu.memory_space<vmem>>, vector<1x128xf32>,
    %cst_115 = arith.constant dense<0.000000e+00> : vector<1x128xf32>
    %586 = tpu.matmul %573, %11, %cst_115 {dimension_numbers = #tpu.dot_dimension_numbers<[1], [0], [0], [1], [0, 0, 1, 1], [], []>} : vector<1x128xf32>, vector<128x128xf32>, vector<1x128xf32> -> vector<1x128xf32>
    %c15_i32 = arith.constant 15 : i32
    %587 = arith.addi %15, %c15_i32 : i32
    %588 = arith.index_cast %587 : i32 to index
    %589 = memref.load %arg3[%588] : memref<64xf32, #tpu.memory_space<smem>>
    %590 = vector.broadcast %589 : f32 to vector<1x128xf32>
    %591 = arith.addf %586, %590 : vector<1x128xf32>
    %592 = arith.subf %3, %583 : vector<1x128xf32>
    %593 = arith.mulf %4, %592 : vector<1x128xf32>
    %594 = arith.addf %583, %593 : vector<1x128xf32>
    %595 = arith.mulf %591, %5 : vector<1x128xf32>
    %596 = arith.addf %594, %595 : vector<1x128xf32>
    %597 = arith.cmpf oge, %596, %576 : vector<1x128xf32>
    %598 = arith.extui %597 : vector<1x128xi1> to vector<1x128xi32>
    %599 = arith.sitofp %598 : vector<1x128xi32> to vector<1x128xf32>
    %cst_116 = arith.constant 1.000000e+00 : f32
    %600 = vector.broadcast %cst_116 : f32 to vector<1x128xf32>
    %601 = arith.subf %600, %599 : vector<1x128xf32>
    %602 = arith.subf %596, %576 : vector<1x128xf32>
    %603 = arith.negf %602 : vector<1x128xf32>
    %604 = math.exp %603 : vector<1x128xf32>
    %cst_117 = arith.constant 1.000000e+00 : f32
    %605 = vector.broadcast %cst_117 : f32 to vector<1x128xf32>
    %606 = arith.addf %605, %604 : vector<1x128xf32>
    %607 = arith.divf %605, %606 : vector<1x128xf32>
    %608 = arith.mulf %573, %6 : vector<1x128xf32>
    %609 = arith.subf %573, %608 : vector<1x128xf32>
    %610 = arith.mulf %601, %609 : vector<1x128xf32>
    %611 = arith.addf %599, %610 : vector<1x128xf32>
    %612 = arith.mulf %7, %576 : vector<1x128xf32>
    %613 = arith.mulf %599, %8 : vector<1x128xf32>
    %614 = arith.addf %612, %613 : vector<1x128xf32>
    %615 = arith.subf %583, %3 : vector<1x128xf32>
    %616 = arith.mulf %9, %615 : vector<1x128xf32>
    %617 = arith.addf %3, %616 : vector<1x128xf32>
    %618 = arith.subf %617, %10 : vector<1x128xf32>
    %619 = arith.mulf %599, %618 : vector<1x128xf32>
    %620 = arith.mulf %601, %596 : vector<1x128xf32>
    %621 = arith.addf %619, %620 : vector<1x128xf32>
    %c15 = arith.constant 15 : index
    %c0_118 = arith.constant 0 : index
    %622 = vector.load %arg4[%c15, %c0_118] : memref<16x128xf32, #tpu.memory_space<vmem>>, vector<1x128xf32>
    tpu.vector_store %arg4[%c15, %c0_118], %621 {strides = array<i32>} : memref<16x128xf32, #tpu.memory_space<vmem>>, vector<1x128xf32>,
    %c15_119 = arith.constant 15 : index
    %c0_120 = arith.constant 0 : index
    %623 = vector.load %arg5[%c15_119, %c0_120] : memref<16x128xf32, #tpu.memory_space<vmem>>, vector<1x128xf32>
    tpu.vector_store %arg5[%c15_119, %c0_120], %607 {strides = array<i32>} : memref<16x128xf32, #tpu.memory_space<vmem>>, vector<1x128xf32>,
    %c0_121 = arith.constant 0 : index
    %c0_122 = arith.constant 0 : index
    %624 = vector.load %arg7[%c0_121, %c0_122] : memref<1x128xf32, #tpu.memory_space<vmem>>, vector<1x128xf32>
    tpu.vector_store %arg7[%c0_121, %c0_122], %621 {strides = array<i32>} : memref<1x128xf32, #tpu.memory_space<vmem>>, vector<1x128xf32>,
    %c0_123 = arith.constant 0 : index
    %c0_124 = arith.constant 0 : index
    %625 = vector.load %arg8[%c0_123, %c0_124] : memref<1x128xf32, #tpu.memory_space<vmem>>, vector<1x128xf32>
    tpu.vector_store %arg8[%c0_123, %c0_124], %611 {strides = array<i32>} : memref<1x128xf32, #tpu.memory_space<vmem>>, vector<1x128xf32>,
    %c0_125 = arith.constant 0 : index
    %c0_126 = arith.constant 0 : index
    %626 = vector.load %arg9[%c0_125, %c0_126] : memref<1x128xf32, #tpu.memory_space<vmem>>, vector<1x128xf32>
    tpu.vector_store %arg9[%c0_125, %c0_126], %614 {strides = array<i32>} : memref<1x128xf32, #tpu.memory_space<vmem>>, vector<1x128xf32>,
    %c3_i32_127 = arith.constant 3 : i32
    %627 = arith.cmpi eq, %arg0, %c3_i32_127 : i32
    %628 = arith.extui %627 : i1 to i32
    %c0_i32_128 = arith.constant 0 : i32
    %629 = arith.cmpi ne, %628, %c0_i32_128 : i32
    scf.if %629 {
      %c0_129 = arith.constant 0 : index
      %c0_130 = arith.constant 0 : index
      %630 = vector.load %arg6[%c0_129, %c0_130] : memref<8x128xf32, #tpu.memory_space<vmem>>, vector<1x128xf32>
      tpu.vector_store %arg6[%c0_129, %c0_130], %621 {strides = array<i32>} : memref<8x128xf32, #tpu.memory_space<vmem>>, vector<1x128xf32>,
      %c1_131 = arith.constant 1 : index
      %c0_132 = arith.constant 0 : index
      %631 = vector.load %arg6[%c1_131, %c0_132] : memref<8x128xf32, #tpu.memory_space<vmem>>, vector<1x128xf32>
      tpu.vector_store %arg6[%c1_131, %c0_132], %611 {strides = array<i32>} : memref<8x128xf32, #tpu.memory_space<vmem>>, vector<1x128xf32>,
      %c2_133 = arith.constant 2 : index
      %c0_134 = arith.constant 0 : index
      %632 = vector.load %arg6[%c2_133, %c0_134] : memref<8x128xf32, #tpu.memory_space<vmem>>, vector<1x128xf32>
      tpu.vector_store %arg6[%c2_133, %c0_134], %614 {strides = array<i32>} : memref<8x128xf32, #tpu.memory_space<vmem>>, vector<1x128xf32>,
    } else {
    }
    return
  }
  func.func @transform_0(%arg0: i32) -> (i32, i32) {
    %c0_i32 = arith.constant 0 : i32
    %c0_i32_0 = arith.constant 0 : i32
    %c0_i32_1 = arith.constant 0 : i32
    return %c0_i32, %c0_i32_0 : i32, i32
  }
  func.func @transform_1(%arg0: i32) -> (i32, i32) {
    %c0_i32 = arith.constant 0 : i32
    %c0_i32_0 = arith.constant 0 : i32
    %c0_i32_1 = arith.constant 0 : i32
    return %c0_i32, %c0_i32_0 : i32, i32
  }
  func.func @transform_2(%arg0: i32) -> i32 {
    %c0_i32 = arith.constant 0 : i32
    %c0_i32_0 = arith.constant 0 : i32
    return %c0_i32 : i32
  }
  func.func @transform_3(%arg0: i32) -> (i32, i32) {
    %c0_i32 = arith.constant 0 : i32
    %c0_i32_0 = arith.constant 0 : i32
    return %arg0, %c0_i32 : i32, i32
  }
  func.func @transform_4(%arg0: i32) -> (i32, i32) {
    %c0_i32 = arith.constant 0 : i32
    %c0_i32_0 = arith.constant 0 : i32
    return %arg0, %c0_i32 : i32, i32
  }
  func.func @transform_5(%arg0: i32) -> (i32, i32) {
    %c0_i32 = arith.constant 0 : i32
    %c0_i32_0 = arith.constant 0 : i32
    %c0_i32_1 = arith.constant 0 : i32
    return %c0_i32, %c0_i32_0 : i32, i32
  }
}

</mosaic_0001>

<bundles_post_ra>
// kernel: tpu_custom_call.1
= control target key start
LH: loop header
LB: loop body
LE: loop exit
PB: predicated region body
PF: predicated region fallthrough
CT: control target
= control target key end

     0   :  { %s4687_s0 = inlined_call_operand.hbm [shape: f32[128,128], index: 0, kind: input, shape index: {}]   ;;  %s4688_s1 = inlined_call_operand.hbm [shape: f32[16,128], index: 1, kind: input, shape index: {}]   ;;  %s4689_s2 = inlined_call_operand.vmem [shape: f32[64], index: 2, kind: input, shape index: {}]   ;;  %s4690_s3 = inlined_call_operand.hbm [shape: f32[64,128], index: 3, kind: output, shape index: {0}]   ;;  %s4691_s4 = inlined_call_operand.hbm [shape: f32[64,128], index: 4, kind: output, shape index: {1}]   ;;  %s4692_s5 = inlined_call_operand.hbm [shape: f32[8,128], index: 5, kind: output, shape index: {2}]  }
   0x1   :  { %4696 = sst [smem:[#allocation22_spill]] %s4689_s2 }
   0x2   :  { %11 = vsyncpa [#allocation6], 0 }
   0x3   :  { %12 = vsyncpa [#allocation10], 0 }
   0x4   :  { %13 = vsyncpa [#allocation8], 0 }
   0x5   :  { %14 = vsyncpa [#allocation7], 0 }
   0x6   :  { %16 = vsyncpa [#allocation7 + $0x1], 0 }
   0x7   :  { %17 = vsyncpa [#allocation14], 0 }
   0x8   :  { %19 = vsyncpa [#allocation14 + $0x1], 0  ;;  %s3846_s18 = smov 0   ;;  %s3848_s19 = smov 0  }
   0x9   :  { %s3850_s20 = smov 0   ;;  %s3852_s21 = smov 0  }
   0xa LB: > { %s3867_s22 = sadd.s32 4294967295, %s3800_s21   ;;  %s4695_s23 = sadd.s32 4294967294, %s3800_s21   ;;  %s3800_s21 = sphi %s3852_s21, %s4720_s21   ;;  %s3796_s20 = sphi %s3850_s20, %s4719_s20   ;;  %s3792_s19 = sphi %s3848_s19, %s4718_s19   ;;  %s3788_s18 = sphi %s3846_s18, %s4717_s18  }
   0xb   : > { %s3871_s24 = sadd.s32 1, %s3800_s21   ;;  %s95_s25 = sadd.s32 1, %s3796_s20 }
   0xc   : > { %s92_s26 = ssub.s32 %s3800_s21, %s3871_s24  ;;  %p105_p0 = scmp.ne.s32.totalorder %s3796_s20, %s3792_s19 }
   0xd   : > { %p93_p1 = scmp.eq.s32.totalorder %s92_s26, 0  ;;  %p4693_p2 = scmp.eq.s32.totalorder %s3867_s22, 3 }
   0xe   : > { %p111_p3 = scmp.ne.s32.totalorder %s3792_s19, %s3788_s18  ;;  %p112_p4 = scmp.eq.s32.totalorder %s4695_s23, 3 }
   0xf   : > { %s3884_s27 = scalar_select %p93_p1, %s3796_s20, %s95_s25  }
  0x10   : > { %p3888_p5 = por %p4693_p2, %p105_p0  ;;  %p3892_p6 = por %p112_p4, %p111_p3 }
  0x11   : > { %p2158_p7 = scmp.ge.s32.totalorder %s3800_s21, 1  ;;  %p166_p8 = scmp.lt.s32.totalorder %s3800_s21, 5 }
  0x12   : > { %s4698_s29 = scalar_select %p3892_p6, 1, 0 }
  0x13   : > { %p4694_p10 = scmp.eq.s32.totalorder %s3867_s22, 0  ;;  %p3900_p11 = pnand %p2158_p7, %p166_p8 }
  0x14   : > { %s3802_s6 = smov [#allocation5]   ;;  %s3803_s9 = smov [#allocation9]  }
  0x15   : > { %s178_s7 = sshll.u32 %s3802_s6, 4  ;;  %p3451_p12 = pneg %p3900_p11  ;;  %s3906_s7 = int_to_ptr.vmem [resolvable:$true] %s178_s7 }
  0x16   : > { %s191_s10 = sshll.u32 %s3803_s9, 4  ;;  %s4701_s2 = sld [smem:[#allocation22_spill]]  ;;  %s3914_s10 = int_to_ptr.vmem [resolvable:$true] %s191_s10 }
  0x17   : > { %p3910_p13 = pnand %p4694_p10, %p3451_p12  ;;  %s3593_s16 = scalar_lea.hbm %s4687_s0, 2048 }
  0x18   : > { %p3594_p0 = scmp.ne.s32.totalorder %s4687_s0, %s3593_s16  ;;  %p3600_p7 = scmp.lt.u32.totalorder %s3593_s16, %s4687_s0 }
  0x19   : > { %p3929_p1 = pneg %p3910_p13 }
  0x1b   : > { %p3596_p3 = pnand %p3929_p1, %p3594_p0 }
  0x1c   : > { %s205_s13 = sshll.u32 %s4701_s2, 4  ;;  %s3919_s13 = int_to_ptr.vmem [resolvable:$true] %s205_s13 }
  0x1d   : > { %p3597_p4 = pneg %p3596_p3 }
  0x1f   : > { %p3602_p8 = pnand %p3600_p7, %p3597_p4 }
  0x21   : > { %3605 = shalt.err (!%p3602_p8)
}
  0x22   : > { %s3606_s11 = scalar_lea.vmem %s3906_s7, 2048  ;;  %p3614_p10 = scmp.lt.s32.totalorder %s3906_s7, %s3906_s7 }
  0x23   : > { %p3607_p12 = scmp.ne.s32.totalorder %s3906_s7, %s3606_s11  ;;  %p3615_p6 = scmp.lt.s32.totalorder %s3606_s11, %s3606_s11 }
  0x25   : > { %p3609_p2 = pnand %p3607_p12, %p3929_p1  ;;  %p3616_p0 = por %p3615_p6, %p3614_p10 }
  0x27   : > { %p3610_p9 = pneg %p3609_p2 }
  0x29   : > { %p3617_p3 = pnand %p3616_p0, %p3610_p9 }
  0x2b   : > { %3620 = shalt.err (!%p3617_p3)
}
  0x2c   : > { %s3804_s12 = smov 128   ;;  %s3805_s14 = smov 8  }
  0x2d   : > { %3454 = dma.hbm_to_vmem [thread:$0]  (!%p3910_p13), %s4687_s0, 2048, %s3906_s7, [#allocation6], %s3804_s12, %s3804_s12, %s3805_s14  }
  0x2e   : > { %s3621_s6 = scalar_lea.hbm %s4688_s1, 256 }
  0x2f   : > { %p3622_p2 = scmp.ne.s32.totalorder %s4688_s1, %s3621_s6  ;;  %p3628_p10 = scmp.lt.u32.totalorder %s3621_s6, %s4688_s1 }
  0x31   : > { %p3624_p6 = pnand %p3622_p2, %p3929_p1 }
  0x33   : > { %p3625_p9 = pneg %p3624_p6 }
  0x35   : > { %p3630_p4 = pnand %p3628_p10, %p3625_p9 }
  0x37   : > { %3633 = shalt.err (!%p3630_p4)
}
  0x38   : > { %s3634_s7 = scalar_lea.vmem %s3914_s10, 256  ;;  %p3642_p0 = scmp.lt.s32.totalorder %s3914_s10, %s3914_s10 }
  0x39   : > { %p3635_p7 = scmp.ne.s32.totalorder %s3914_s10, %s3634_s7  ;;  %p3643_p3 = scmp.lt.s32.totalorder %s3634_s7, %s3634_s7 }
  0x3b   : > { %p3637_p8 = pnand %p3635_p7, %p3929_p1  ;;  %p3644_p2 = por %p3643_p3, %p3642_p0 }
  0x3d   : > { %p3638_p12 = pneg %p3637_p8 }
  0x3f   : > { %p3645_p6 = pnand %p3644_p2, %p3638_p12 }
  0x41   : > { %3648 = shalt.err (!%p3645_p6)
}
  0x42   : > { %3457 = dma.hbm_to_vmem [thread:$0]  (!%p3910_p13), %s4688_s1, 256, %s3914_s10, [#allocation10], %s3804_s12, %s3804_s12, %s3805_s14  }
  0x43   : > { %s3649_s15 = scalar_lea.vmem %s3919_s13, 16  ;;  %p3657_p7 = scmp.lt.s32.totalorder %s3919_s13, %s3919_s13 }
  0x44   : > { %p3650_p9 = scmp.ne.s32.totalorder %s3919_s13, %s3649_s15  ;;  %p3658_p8 = scmp.lt.s32.totalorder %s3649_s15, %s3649_s15 }
  0x46   : > { %p3652_p10 = pnand %p3650_p9, %p3929_p1  ;;  %p3659_p12 = por %p3658_p8, %p3657_p7 }
  0x48   : > { %p3653_p4 = pneg %p3652_p10 }
  0x4a   : > { %p3660_p0 = pnand %p3659_p12, %p3653_p4 }
  0x4c   : > { %3663 = shalt.err (!%p3660_p0)
}
  0x4d   : > { %s3806_s16 = smov [#allocation11]   ;;  %218 = sbr.rel (%p3900_p11) target bundleno = 3852 (0xf0c), region = 32 }
  0x4e   : > { %3460 = dma.vmem_to_smem (!%p3910_p13), %s3919_s13, 16, %s3806_s16, [#allocation8]  }
  0x4f   : > { %p4703_p3 = scmp.eq.s32.totalorder (!%p3900_p11), %s3867_s22, 0 }
  0x54   : > { %3763 = dma.done.wait (%p4703_p3), [#allocation6], 2048   ;;  %p4704_p1 = pmov %p4703_p3 }
  0x56   : > { %3765 = vsyncadd (%p4704_p1), [#allocation6], 4294965248  ;;  %p4705_p2 = pmov %p4704_p1 }
  0x57   : > { %p4706_p6 = pmov %p4704_p1 }
  0x58   : > { %3767 = dma.done.wait (%p4705_p2), [#allocation10], 256  }
  0x59   : > { %3769 = vsyncadd (%p4706_p6), [#allocation10], 4294967040  ;;  %p4707_p9 = pmov %p4704_p1 }
  0x5a   : > { %p4708_p13 = pmov %p4704_p1 }
  0x5b   : > { %3771 = dma.done.wait (%p4707_p9), [#allocation8], 16  }
  0x5c   : > { %3773 = vsyncadd (%p4708_p13), [#allocation8], 4294967280 }
  0x5d   : > { %232 = sfence }
  0x5e   : > { %s243_s30 = sand.u32 1, %s3792_s19   ;;  %p4709_p11 = scmp.ne.s32.totalorder %s3867_s22, 0 }
  0x5f   : > { %s2166_s8 = sshll.u32 %s243_s30, 4  ;;  %v261_v0 = vld [vmem:[#allocation9 + $0x8] sm:$0x1] (!%p4709_p11)  ;;  %v263_v1 = vld [vmem:[#allocation9 + $0x9] sm:$0x1] (!%p4709_p11)  ;;  %v3807_v3 = vmov (!%p4709_p11), 0.0  }
  0x60   : > { %s3999_s10 = scalar_lea.vmem [#allocation12], %s2166_s8  ;;  %s4001_s13 = scalar_lea.vmem [#allocation13], %s2166_s8  ;;  %v265_v2 = vld [vmem:[#allocation9 + $0xa] sm:$0x1] (!%p4709_p11)  ;;  %262 = vst [vmem:[#allocation2] sm:$0x1] (!%p4709_p11), %v261_v0 }
  0x61   : > { %260 = sbr.rel (%p4709_p11) target bundleno = 104 (0x68), region = 48  ;;  %264 = vst [vmem:[#allocation3] sm:$0x1] (!%p4709_p11), %v263_v1  ;;  %266 = vst [vmem:[#allocation4] sm:$0x1] (!%p4709_p11), %v265_v2 }
  0x62   : > { %267 = vst [vmem:[#allocation15] sm:$0xff] (!%p4709_p11), %v3807_v3 }
  0x68 PF: > { %v276_v4 = vld [vmem:[#allocation5] sm:$0xff]  ;;  %v277_v5 = vld [vmem:[#allocation5 + $0x8] sm:$0xff]  ;;  %v278_v6 = vld [vmem:[#allocation5 + $0x10] sm:$0xff]  ;;  %v3808_v7 = vmov 0.0|0.0   ;;  %vm3809_vm0 = vmmov 0   ;;  %v3810_v10 = vmov 0.0  }
  0x69   : > { %3047 = vmatprep.subr.bf16.mxu0 %v3808_v7  ;;  %v4006_v8 = vpack.c.bf16 %v277_v5, %v276_v4  ;;  %v279_v9 = vld [vmem:[#allocation5 + $0x18] sm:$0xff]  ;;  %2519 = vmatprep.mubr.msk.f32.mxu0 %vm3809_vm0, %v3810_v10  ;;  %v280_v12 = vld [vmem:[#allocation5 + $0x20] sm:$0xff]  ;;  %v281_v13 = vld [vmem:[#allocation5 + $0x28] sm:$0xff]  ;;  %s4078_s26 = sshll.u32 %s3867_s22, 4  ;;  %p2202_p10 = scmp.ne.s32.totalorder %s3867_s22, 3 }
  0x6a   : > { %3071 = vmatprep.subr.bf16.mxu1 %v3808_v7  ;;  %2554 = vmatprep.mubr.msk.f32.mxu1 %vm3809_vm0, %v3810_v10  ;;  %v4014_v11 = vpack.c.bf16 %v279_v9, %v278_v6  ;;  %v4020_v14 = vpack.c.bf16 %v281_v13, %v280_v12  ;;  %v282_v15 = vld [vmem:[#allocation5 + $0x30] sm:$0xff]  ;;  %v283_v16 = vld [vmem:[#allocation5 + $0x38] sm:$0xff]  ;;  %v284_v18 = vld [vmem:[#allocation5 + $0x40] sm:$0xff]  ;;  %s296_s12 = sld [smem:[#allocation11 + %s4078_s26]]  ;;  %s400_s14 = sadd.s32 1, %s4078_s26 }
  0x6b   : > { %3049 = vmatpush3.bf16.msra.mxu0 %v4006_v8  ;;  %3073 = vmatpush3.bf16.msra.mxu1 %v4006_v8  ;;  %v4026_v17 = vpack.c.bf16 %v283_v16, %v282_v15  ;;  %v285_v19 = vld [vmem:[#allocation5 + $0x48] sm:$0xff]  ;;  %v286_v21 = vld [vmem:[#allocation5 + $0x50] sm:$0xff]  ;;  %v287_v22 = vld [vmem:[#allocation5 + $0x58] sm:$0xff]  ;;  %s401_s17 = sld [smem:[#allocation11 + %s400_s14]]  ;;  %s505_s25 = sadd.s32 2, %s4078_s26 }
  0x6c   : > { %3050 = vmatprep.subr.bf16.mxu0 %v3808_v7  ;;  %3074 = vmatprep.subr.bf16.mxu1 %v3808_v7  ;;  %v4032_v20 = vpack.c.bf16 %v285_v19, %v284_v18  ;;  %v4038_v23 = vpack.c.bf16 %v287_v22, %v286_v21  ;;  %v288_v24 = vld [vmem:[#allocation5 + $0x60] sm:$0xff]  ;;  %v289_v25 = vld [vmem:[#allocation5 + $0x68] sm:$0xff]  ;;  %v290_v27 = vld [vmem:[#allocation5 + $0x70] sm:$0xff]  ;;  %s506_s6 = sld [smem:[#allocation11 + %s505_s25]]  ;;  %s610_s9 = sadd.s32 3, %s4078_s26 }
  0x6d   : > { %v4044_v26 = vpack.c.bf16 %v289_v25, %v288_v24  ;;  %v291_v28 = vld [vmem:[#allocation5 + $0x78] sm:$0xff]  ;;  %v4080_v31 = vld [vmem:[#allocation9] sm:$0x1]  ;;  %v4084_v34 = vld [vmem:[#allocation9 + $0x1] sm:$0x1]  ;;  %s611_s11 = sld [smem:[#allocation11 + %s610_s9]] }
  0x6e   : > { %v4050_v29 = vpack.c.bf16 %v291_v28, %v290_v27  ;;  %v293_v30 = vld [vmem:[#allocation3] sm:$0x1]  ;;  %v292_v32 = vld [vmem:[#allocation2] sm:$0x1]  ;;  %v4087_v36 = vld [vmem:[#allocation9 + $0x6] sm:$0x1] }
  0x6f   : > { %3052 = vmatpush3.bf16.msra.mxu0 %v4014_v11  ;;  %3076 = vmatpush3.bf16.msra.mxu1 %v4014_v11  ;;  %v368_v33 = vsub.f32 %v4080_v31, %v292_v32  ;;  %v391_v35 = vsub.f32 %v292_v32, %v4080_v31  ;;  %v4091_v40 = vld [vmem:[#allocation9 + $0x3] sm:$0x1]  ;;  %v4093_v41 = vld [vmem:[#allocation9 + $0x2] sm:$0x1]  ;;  %v294_v49 = vld [vmem:[#allocation4] sm:$0x1] }
  0x70   : > { %3053 = vmatprep.subr.bf16.mxu0 %v3808_v7  ;;  %3077 = vmatprep.subr.bf16.mxu1 %v3808_v7  ;;  %v297_v38 = vstv %s296_s12  ;;  %v384_v46 = vmul.f32 %v293_v30, %v4091_v40  ;;  %v4098_v50 = vld [vmem:[#allocation9 + $0x7] sm:$0x1]  ;;  %v4125_v4 = vld [vmem:[#allocation9 + $0x5] sm:$0x1]  ;;  %v4127_v5 = vld [vmem:[#allocation9 + $0x4] sm:$0x1] }
  0x71   : > { %v369_v37 = vmul.f32 %v368_v33, %v4084_v34  ;;  %v392_v39 = vmul.f32 %v391_v35, %v4087_v36  ;;  %v402_v6 = vstv %s401_s17  ;;  %v388_v16 = vmul.f32 %v294_v49, %v4127_v5  ;;  %s715_s7 = sadd.s32 4, %s4078_s26  ;;  %s820_s23 = sadd.s32 5, %s4078_s26 }
  0x72   : > { %v385_v52 = vsub.f32 %v293_v30, %v384_v46  ;;  %s716_s2 = sld [smem:[#allocation11 + %s715_s7]]  ;;  %s925_s16 = sadd.s32 6, %s4078_s26 }
  0x73   : > { %3055 = vmatpush3.bf16.msra.mxu0 %v4020_v14  ;;  %3079 = vmatpush3.bf16.msra.mxu1 %v4020_v14  ;;  %v370_v44 = vadd.f32 %v369_v37, %v292_v32  ;;  %v393_v48 = vadd.f32 %v392_v39, %v4080_v31  ;;  %s821_s15 = sld [smem:[#allocation11 + %s820_s23]]  ;;  %s1030_s12 = sadd.s32 7, %s4078_s26 }
  0x74   : > { %3056 = vmatprep.subr.bf16.mxu0 %v3808_v7  ;;  %3080 = vmatprep.subr.bf16.mxu1 %v3808_v7  ;;  %s926_s8 = sld [smem:[#allocation11 + %s925_s16]]  ;;  %s1135_s17 = sadd.s32 8, %s4078_s26 }
  0x75   : > { %v394_v54 = vsub.f32 %v393_v48, %v4098_v50  ;;  %s1031_s14 = sld [smem:[#allocation11 + %s1030_s12]] }
  0x76   : > { %s1136_s25 = sld [smem:[#allocation11 + %s1135_s17]] }
  0x77   : > { %3058 = vmatpush3.bf16.msra.mxu0 %v4026_v17  ;;  %3082 = vmatpush3.bf16.msra.mxu1 %v4026_v17 }
  0x78   : > { %3059 = vmatprep.subr.bf16.mxu0 %v3808_v7  ;;  %3083 = vmatprep.subr.bf16.mxu1 %v3808_v7 }
  0x7b   : > { %3061 = vmatpush3.bf16.msra.mxu0 %v4032_v20  ;;  %3085 = vmatpush3.bf16.msra.mxu1 %v4032_v20 }
  0x7c   : > { %3062 = vmatprep.subr.bf16.mxu0 %v3808_v7  ;;  %3086 = vmatprep.subr.bf16.mxu1 %v3808_v7 }
  0x7f   : > { %3064 = vmatpush3.bf16.msra.mxu0 %v4038_v23  ;;  %3088 = vmatpush3.bf16.msra.mxu1 %v4038_v23 }
  0x80   : > { %3065 = vmatprep.subr.bf16.mxu0 %v3808_v7  ;;  %3089 = vmatprep.subr.bf16.mxu1 %v3808_v7 }
  0x83   : > { %3067 = vmatpush3.bf16.msra.mxu0 %v4044_v26  ;;  %3091 = vmatpush3.bf16.msra.mxu1 %v4044_v26 }
  0x84   : > { %3068 = vmatprep.subr.bf16.mxu0 %v3808_v7  ;;  %3092 = vmatprep.subr.bf16.mxu1 %v3808_v7 }
  0x87   : > { %3070 = vmatpush3.bf16.msra.mxu0 %v4050_v29  ;;  %3094 = vmatpush3.bf16.msra.mxu1 %v4050_v29 }
  0x88   : > { %3095 = vmatprep.subr.bf16.mxu0 %v3808_v7  ;;  %3119 = vmatprep.subr.bf16.mxu1 %v3808_v7 }
  0x8a   : > { %2520 = vmatmul.mubr.f32.vlgmr.msra.gmra.mrb[0].mxu0 %v293_v30 }
  0x8b   : > { %3097 = vmatpush3.bf16.msra.mxu0 %v4006_v8  ;;  %2589 = vmatprep.mubr.msk.f32.mxu0 %vm3809_vm0, %v3810_v10 }
  0x8c   : > { %3098 = vmatprep.subr.bf16.mxu0 %v3808_v7 }
  0x8f   : > { %3100 = vmatpush3.bf16.msra.mxu0 %v4014_v11 }
  0x90   : > { %3101 = vmatprep.subr.bf16.mxu0 %v3808_v7 }
  0x93   : > { %3103 = vmatpush3.bf16.msra.mxu0 %v4020_v14 }
  0x94   : > { %3104 = vmatprep.subr.bf16.mxu0 %v3808_v7 }
  0x97   : > { %3106 = vmatpush3.bf16.msra.mxu0 %v4026_v17 }
  0x98   : > { %3107 = vmatprep.subr.bf16.mxu0 %v3808_v7 }
  0x9b   : > { %3109 = vmatpush3.bf16.msra.mxu0 %v4032_v20 }
  0x9c   : > { %3110 = vmatprep.subr.bf16.mxu0 %v3808_v7 }
  0x9f   : > { %3112 = vmatpush3.bf16.msra.mxu0 %v4038_v23 }
  0xa0   : > { %3113 = vmatprep.subr.bf16.mxu0 %v3808_v7 }
  0xa3   : > { %3115 = vmatpush3.bf16.msra.mxu0 %v4044_v26 }
  0xa4   : > { %3116 = vmatprep.subr.bf16.mxu0 %v3808_v7 }
  0xa7   : > { %3118 = vmatpush3.bf16.msra.mxu0 %v4050_v29 }
  0xa8   : > { %3143 = vmatprep.subr.bf16.mxu0 %v3808_v7 }
 0x15d   : > { %v364_v42 = vpop.f32.mrb[0].mxu0 }
 0x15e   : > { %v365_v43 = vadd.f32 %v364_v42, %v297_v38  ;;  %v2521_v45 = vpop.f32.mrb[1].mxu0 }
 0x160   : > { %v371_v47 = vmul.f32 %v365_v43, %v4093_v41 }
 0x162   : > { %v372_v51 = vadd.f32 %v371_v47, %v370_v44 }
 0x164   : > { %v377_v53 = vsub.f32 %v372_v51, %v294_v49  ;;  %vm373_vm1 = vcmp.ge.f32.partialorder %v372_v51, %v294_v49 }
 0x165   : > { %v2170_v55 = vsel %vm373_vm1, 1.0, %v3810_v10 }
 0x166   : > { %v2171_v56 = vmul.f32 -1.442695, %v377_v53  ;;  %v376_v57 = vsub.f32 1.0, %v2170_v55  ;;  %v395_v59 = vmul.f32 %v2170_v55, %v394_v54  ;;  %v389_v15 = vmul.f32 %v2170_v55, %v4125_v4 }
 0x168   : > { %3521 = vpow2.f32 %v2171_v56  ;;  %v386_v58 = vmul.f32 %v385_v52, %v376_v57  ;;  %v396_v60 = vmul.f32 %v376_v57, %v372_v51  ;;  %v390_v27 = vadd.f32 %v389_v15, %v388_v16 }
 0x169   : > { %v507_v52 = vstv %s506_s6  ;;  %s1240_s6 = sadd.s32 9, %s4078_s26 }
 0x16a   : > { %v387_v61 = vadd.f32 %v2170_v55, %v386_v58  ;;  %v397_v62 = vadd.f32 %v396_v60, %v395_v59  ;;  %v493_v59 = vmul.f32 %v390_v27, %v4127_v5  ;;  %s1241_s9 = sld [smem:[#allocation11 + %s1240_s6]] }
 0x16c   : > { %398 = vst [vmem:[%s3999_s10] sm:$0x1] %v397_v62  ;;  %2555 = vmatmul.mubr.f32.vlgmr.msra.gmra.mrb[0].mxu1 %v387_v61  ;;  %v496_v2 = vsub.f32 %v397_v62, %v4080_v31  ;;  %v473_v3 = vsub.f32 %v4080_v31, %v397_v62  ;;  %v489_v25 = vmul.f32 %v387_v61, %v4091_v40 }
 0x16d   : > { %3121 = vmatpush3.bf16.msra.mxu1 %v4006_v8  ;;  %2624 = vmatprep.mubr.msk.f32.mxu1 %vm3809_vm0, %v3810_v10 }
 0x16e   : > { %3122 = vmatprep.subr.bf16.mxu1 %v3808_v7  ;;  %v474_v9 = vmul.f32 %v473_v3, %v4084_v34  ;;  %v497_v12 = vmul.f32 %v496_v2, %v4087_v36  ;;  %v490_v35 = vsub.f32 %v387_v61, %v489_v25 }
 0x170   : > { %v475_v21 = vadd.f32 %v474_v9, %v397_v62  ;;  %v498_v24 = vadd.f32 %v497_v12, %v4080_v31 }
 0x171   : > { %3124 = vmatpush3.bf16.msra.mxu1 %v4014_v11 }
 0x172   : > { %v3522_v63 = vpop.eup %3521  ;;  %3125 = vmatprep.subr.bf16.mxu1 %v3808_v7  ;;  %v499_v32 = vsub.f32 %v498_v24, %v4098_v50 }
 0x173   : > { %v381_v0 = vadd.f32 1.0, %v3522_v63 }
 0x175   : > { %3523 = vrcp.f32 %v381_v0  ;;  %3127 = vmatpush3.bf16.msra.mxu1 %v4020_v14 }
 0x176   : > { %3128 = vmatprep.subr.bf16.mxu1 %v3808_v7 }
 0x179   : > { %3130 = vmatpush3.bf16.msra.mxu1 %v4026_v17 }
 0x17a   : > { %3131 = vmatprep.subr.bf16.mxu1 %v3808_v7 }
 0x17d   : > { %3133 = vmatpush3.bf16.msra.mxu1 %v4032_v20 }
 0x17e   : > { %3134 = vmatprep.subr.bf16.mxu1 %v3808_v7 }
 0x17f   : > { %v3524_v1 = vpop.eup %3523 }
 0x180   : > { %399 = vst [vmem:[%s4001_s13] sm:$0x1] %v3524_v1 }
 0x181   : > { %3136 = vmatpush3.bf16.msra.mxu1 %v4038_v23 }
 0x182   : > { %3137 = vmatprep.subr.bf16.mxu1 %v3808_v7 }
 0x185   : > { %3139 = vmatpush3.bf16.msra.mxu1 %v4044_v26 }
 0x186   : > { %3140 = vmatprep.subr.bf16.mxu1 %v3808_v7 }
 0x189   : > { %3142 = vmatpush3.bf16.msra.mxu1 %v4050_v29 }
 0x18a   : > { %3167 = vmatprep.subr.bf16.mxu1 %v3808_v7 }
 0x23f   : > { %v469_v13 = vpop.f32.mrb[0].mxu1 }
 0x240   : > { %v470_v18 = vadd.f32 %v469_v13, %v402_v6  ;;  %v2556_v19 = vpop.f32.mrb[1].mxu1 }
 0x242   : > { %v476_v22 = vmul.f32 %v470_v18, %v4093_v41 }
 0x244   : > { %v477_v28 = vadd.f32 %v476_v22, %v475_v21 }
 0x246   : > { %vm478_vm2 = vcmp.ge.f32.partialorder %v477_v28, %v390_v27  ;;  %v482_v30 = vsub.f32 %v477_v28, %v390_v27 }
 0x247   : > { %v2172_v33 = vsel %vm478_vm2, 1.0, %v3810_v10 }
 0x248   : > { %v481_v37 = vsub.f32 1.0, %v2172_v33  ;;  %v2173_v38 = vmul.f32 -1.442695, %v482_v30  ;;  %v500_v39 = vmul.f32 %v2172_v33, %v499_v32  ;;  %v494_v56 = vmul.f32 %v2172_v33, %v4125_v4 }
 0x249   : > { %v612_v30 = vstv %s611_s11  ;;  %s1345_s11 = sadd.s32 10, %s4078_s26 }
 0x24a   : > { %3525 = vpow2.f32 %v2173_v38  ;;  %v501_v42 = vmul.f32 %v481_v37, %v477_v28  ;;  %v491_v43 = vmul.f32 %v490_v35, %v481_v37  ;;  %v495_v0 = vadd.f32 %v494_v56, %v493_v59  ;;  %s1346_s7 = sld [smem:[#allocation11 + %s1345_s11]] }
 0x24c   : > { %v502_v44 = vadd.f32 %v501_v42, %v500_v39  ;;  %v492_v45 = vadd.f32 %v2172_v33, %v491_v43  ;;  %v598_v42 = vmul.f32 %v495_v0, %v4127_v5 }
 0x24e   : > { %503 = vst [vmem:[%s3999_s10 + $0x1] sm:$0x1] %v502_v44  ;;  %2590 = vmatmul.mubr.f32.vlgmr.msra.gmra.mrb[2].mxu0 %v492_v45  ;;  %v601_v49 = vsub.f32 %v502_v44, %v4080_v31  ;;  %v578_v51 = vsub.f32 %v4080_v31, %v502_v44  ;;  %v594_v63 = vmul.f32 %v492_v45, %v4091_v40 }
 0x24f   : > { %3145 = vmatpush3.bf16.msra.mxu0 %v4006_v8  ;;  %2659 = vmatprep.mubr.msk.f32.mxu0 %vm3809_vm0, %v3810_v10 }
 0x250   : > { %3146 = vmatprep.subr.bf16.mxu0 %v3808_v7  ;;  %v579_v53 = vmul.f32 %v578_v51, %v4084_v34  ;;  %v602_v54 = vmul.f32 %v601_v49, %v4087_v36  ;;  %v595_v15 = vsub.f32 %v492_v45, %v594_v63 }
 0x252   : > { %v580_v60 = vadd.f32 %v579_v53, %v502_v44  ;;  %v603_v62 = vadd.f32 %v602_v54, %v4080_v31 }
 0x253   : > { %3148 = vmatpush3.bf16.msra.mxu0 %v4014_v11 }
 0x254   : > { %v3526_v46 = vpop.eup %3525  ;;  %3149 = vmatprep.subr.bf16.mxu0 %v3808_v7  ;;  %v604_v3 = vsub.f32 %v603_v62, %v4098_v50 }
 0x255   : > { %v486_v47 = vadd.f32 1.0, %v3526_v46 }
 0x257   : > { %3527 = vrcp.f32 %v486_v47  ;;  %3151 = vmatpush3.bf16.msra.mxu0 %v4020_v14 }
 0x258   : > { %3152 = vmatprep.subr.bf16.mxu0 %v3808_v7 }
 0x25b   : > { %3154 = vmatpush3.bf16.msra.mxu0 %v4026_v17 }
 0x25c   : > { %3155 = vmatprep.subr.bf16.mxu0 %v3808_v7 }
 0x25f   : > { %3157 = vmatpush3.bf16.msra.mxu0 %v4032_v20 }
 0x260   : > { %3158 = vmatprep.subr.bf16.mxu0 %v3808_v7 }
 0x261   : > { %v3528_v48 = vpop.eup %3527 }
 0x262   : > { %504 = vst [vmem:[%s4001_s13 + $0x1] sm:$0x1] %v3528_v48 }
 0x263   : > { %3160 = vmatpush3.bf16.msra.mxu0 %v4038_v23 }
 0x264   : > { %3161 = vmatprep.subr.bf16.mxu0 %v3808_v7 }
 0x267   : > { %3163 = vmatpush3.bf16.msra.mxu0 %v4044_v26 }
 0x268   : > { %3164 = vmatprep.subr.bf16.mxu0 %v3808_v7 }
 0x26b   : > { %3166 = vmatpush3.bf16.msra.mxu0 %v4050_v29 }
 0x26c   : > { %3191 = vmatprep.subr.bf16.mxu0 %v3808_v7 }
 0x321   : > { %v574_v55 = vpop.f32.mrb[2].mxu0 }
 0x322   : > { %v575_v57 = vadd.f32 %v574_v55, %v507_v52  ;;  %v2591_v58 = vpop.f32.mrb[3].mxu0 }
 0x324   : > { %v581_v61 = vmul.f32 %v575_v57, %v4093_v41 }
 0x326   : > { %v582_v1 = vadd.f32 %v581_v61, %v580_v60 }
 0x328   : > { %vm583_vm3 = vcmp.ge.f32.partialorder %v582_v1, %v495_v0  ;;  %v587_v2 = vsub.f32 %v582_v1, %v495_v0 }
 0x329   : > { %v2174_v6 = vsel %vm583_vm3, 1.0, %v3810_v10 }
 0x32a   : > { %v586_v9 = vsub.f32 1.0, %v2174_v6  ;;  %v2175_v12 = vmul.f32 -1.442695, %v587_v2  ;;  %v605_v13 = vmul.f32 %v2174_v6, %v604_v3  ;;  %v599_v37 = vmul.f32 %v2174_v6, %v4125_v4 }
 0x32b   : > { %v717_v2 = vstv %s716_s2  ;;  %s1450_s2 = sadd.s32 11, %s4078_s26 }
 0x32c   : > { %3529 = vpow2.f32 %v2175_v12  ;;  %v606_v16 = vmul.f32 %v586_v9, %v582_v1  ;;  %v596_v18 = vmul.f32 %v595_v15, %v586_v9  ;;  %v600_v47 = vadd.f32 %v599_v37, %v598_v42  ;;  %s1451_s23 = sld [smem:[#allocation11 + %s1450_s2]] }
 0x32e   : > { %v607_v19 = vadd.f32 %v606_v16, %v605_v13  ;;  %v597_v21 = vadd.f32 %v2174_v6, %v596_v18  ;;  %v703_v16 = vmul.f32 %v600_v47, %v4127_v5 }
 0x330   : > { %608 = vst [vmem:[%s3999_s10 + $0x2] sm:$0x1] %v607_v19  ;;  %2625 = vmatmul.mubr.f32.vlgmr.msra.gmra.mrb[2].mxu1 %v597_v21  ;;  %v706_v27 = vsub.f32 %v607_v19, %v4080_v31  ;;  %v683_v28 = vsub.f32 %v4080_v31, %v607_v19  ;;  %v699_v46 = vmul.f32 %v597_v21, %v4091_v40 }
 0x331   : > { %3169 = vmatpush3.bf16.msra.mxu1 %v4006_v8  ;;  %2694 = vmatprep.mubr.msk.f32.mxu1 %vm3809_vm0, %v3810_v10 }
 0x332   : > { %3170 = vmatprep.subr.bf16.mxu1 %v3808_v7  ;;  %v684_v32 = vmul.f32 %v683_v28, %v4084_v34  ;;  %v707_v33 = vmul.f32 %v706_v27, %v4087_v36  ;;  %v700_v56 = vsub.f32 %v597_v21, %v699_v46 }
 0x334   : > { %v685_v43 = vadd.f32 %v684_v32, %v607_v19  ;;  %v708_v45 = vadd.f32 %v707_v33, %v4080_v31 }
 0x335   : > { %3172 = vmatpush3.bf16.msra.mxu1 %v4014_v11 }
 0x336   : > { %v3530_v22 = vpop.eup %3529  ;;  %3173 = vmatprep.subr.bf16.mxu1 %v3808_v7  ;;  %v709_v51 = vsub.f32 %v708_v45, %v4098_v50 }
 0x337   : > { %v591_v24 = vadd.f32 1.0, %v3530_v22 }
 0x339   : > { %3531 = vrcp.f32 %v591_v24  ;;  %3175 = vmatpush3.bf16.msra.mxu1 %v4020_v14 }
 0x33a   : > { %3176 = vmatprep.subr.bf16.mxu1 %v3808_v7 }
 0x33d   : > { %3178 = vmatpush3.bf16.msra.mxu1 %v4026_v17 }
 0x33e   : > { %3179 = vmatprep.subr.bf16.mxu1 %v3808_v7 }
 0x341   : > { %3181 = vmatpush3.bf16.msra.mxu1 %v4032_v20 }
 0x342   : > { %3182 = vmatprep.subr.bf16.mxu1 %v3808_v7 }
 0x343   : > { %v3532_v25 = vpop.eup %3531 }
 0x344   : > { %609 = vst [vmem:[%s4001_s13 + $0x2] sm:$0x1] %v3532_v25 }
 0x345   : > { %3184 = vmatpush3.bf16.msra.mxu1 %v4038_v23 }
 0x346   : > { %3185 = vmatprep.subr.bf16.mxu1 %v3808_v7 }
 0x349   : > { %3187 = vmatpush3.bf16.msra.mxu1 %v4044_v26 }
 0x34a   : > { %3188 = vmatprep.subr.bf16.mxu1 %v3808_v7 }
 0x34d   : > { %3190 = vmatpush3.bf16.msra.mxu1 %v4050_v29 }
 0x34e   : > { %3215 = vmatprep.subr.bf16.mxu1 %v3808_v7 }
 0x403   : > { %v679_v35 = vpop.f32.mrb[2].mxu1 }
 0x404   : > { %v680_v38 = vadd.f32 %v679_v35, %v612_v30  ;;  %v2626_v39 = vpop.f32.mrb[3].mxu1 }
 0x406   : > { %v686_v44 = vmul.f32 %v680_v38, %v4093_v41 }
 0x408   : > { %v687_v48 = vadd.f32 %v686_v44, %v685_v43 }
 0x40a   : > { %vm688_vm4 = vcmp.ge.f32.partialorder %v687_v48, %v600_v47  ;;  %v692_v49 = vsub.f32 %v687_v48, %v600_v47 }
 0x40b   : > { %v2176_v52 = vsel %vm688_vm4, 1.0, %v3810_v10 }
 0x40c   : > { %v691_v53 = vsub.f32 1.0, %v2176_v52  ;;  %v2177_v54 = vmul.f32 -1.442695, %v692_v49  ;;  %v710_v55 = vmul.f32 %v2176_v52, %v709_v51  ;;  %v704_v12 = vmul.f32 %v2176_v52, %v4125_v4 }
 0x40d   : > { %v822_v49 = vstv %s821_s15  ;;  %s1555_s15 = sadd.s32 12, %s4078_s26 }
 0x40e   : > { %3533 = vpow2.f32 %v2177_v54  ;;  %v711_v57 = vmul.f32 %v691_v53, %v687_v48  ;;  %v701_v58 = vmul.f32 %v700_v56, %v691_v53  ;;  %v705_v24 = vadd.f32 %v704_v12, %v703_v16  ;;  %s1556_s16 = sld [smem:[#allocation11 + %s1555_s15]] }
 0x410   : > { %v712_v59 = vadd.f32 %v711_v57, %v710_v55  ;;  %v702_v60 = vadd.f32 %v2176_v52, %v701_v58  ;;  %v808_v57 = vmul.f32 %v705_v24, %v4127_v5 }
 0x412   : > { %713 = vst [vmem:[%s3999_s10 + $0x3] sm:$0x1] %v712_v59  ;;  %2660 = vmatmul.mubr.f32.vlgmr.msra.gmra.mrb[4].mxu0 %v702_v60  ;;  %v811_v0 = vsub.f32 %v712_v59, %v4080_v31  ;;  %v788_v1 = vsub.f32 %v4080_v31, %v712_v59  ;;  %v804_v22 = vmul.f32 %v702_v60, %v4091_v40 }
 0x413   : > { %3193 = vmatpush3.bf16.msra.mxu0 %v4006_v8  ;;  %2729 = vmatprep.mubr.msk.f32.mxu0 %vm3809_vm0, %v3810_v10 }
 0x414   : > { %3194 = vmatprep.subr.bf16.mxu0 %v3808_v7  ;;  %v789_v3 = vmul.f32 %v788_v1, %v4084_v34  ;;  %v812_v6 = vmul.f32 %v811_v0, %v4087_v36  ;;  %v805_v37 = vsub.f32 %v702_v60, %v804_v22 }
 0x416   : > { %v790_v18 = vadd.f32 %v789_v3, %v712_v59  ;;  %v813_v21 = vadd.f32 %v812_v6, %v4080_v31 }
 0x417   : > { %3196 = vmatpush3.bf16.msra.mxu0 %v4014_v11 }
 0x418   : > { %v3534_v61 = vpop.eup %3533  ;;  %3197 = vmatprep.subr.bf16.mxu0 %v3808_v7  ;;  %v814_v28 = vsub.f32 %v813_v21, %v4098_v50 }
 0x419   : > { %v696_v62 = vadd.f32 1.0, %v3534_v61 }
 0x41b   : > { %3535 = vrcp.f32 %v696_v62  ;;  %3199 = vmatpush3.bf16.msra.mxu0 %v4020_v14 }
 0x41c   : > { %3200 = vmatprep.subr.bf16.mxu0 %v3808_v7 }
 0x41f   : > { %3202 = vmatpush3.bf16.msra.mxu0 %v4026_v17 }
 0x420   : > { %3203 = vmatprep.subr.bf16.mxu0 %v3808_v7 }
 0x423   : > { %3205 = vmatpush3.bf16.msra.mxu0 %v4032_v20 }
 0x424   : > { %3206 = vmatprep.subr.bf16.mxu0 %v3808_v7 }
 0x425   : > { %v3536_v63 = vpop.eup %3535 }
 0x426   : > { %714 = vst [vmem:[%s4001_s13 + $0x3] sm:$0x1] %v3536_v63 }
 0x427   : > { %3208 = vmatpush3.bf16.msra.mxu0 %v4038_v23 }
 0x428   : > { %3209 = vmatprep.subr.bf16.mxu0 %v3808_v7 }
 0x42b   : > { %3211 = vmatpush3.bf16.msra.mxu0 %v4044_v26 }
 0x42c   : > { %3212 = vmatprep.subr.bf16.mxu0 %v3808_v7 }
 0x42f   : > { %3214 = vmatpush3.bf16.msra.mxu0 %v4050_v29 }
 0x430   : > { %3239 = vmatprep.subr.bf16.mxu0 %v3808_v7 }
 0x4e5   : > { %v784_v9 = vpop.f32.mrb[4].mxu0 }
 0x4e6   : > { %v785_v13 = vadd.f32 %v784_v9, %v717_v2  ;;  %v2661_v15 = vpop.f32.mrb[5].mxu0 }
 0x4e8   : > { %v791_v19 = vmul.f32 %v785_v13, %v4093_v41 }
 0x4ea   : > { %v792_v25 = vadd.f32 %v791_v19, %v790_v18 }
 0x4ec   : > { %vm793_vm5 = vcmp.ge.f32.partialorder %v792_v25, %v705_v24  ;;  %v797_v27 = vsub.f32 %v792_v25, %v705_v24 }
 0x4ed   : > { %v2178_v30 = vsel %vm793_vm5, 1.0, %v3810_v10 }
 0x4ee   : > { %v796_v32 = vsub.f32 1.0, %v2178_v30  ;;  %v2179_v33 = vmul.f32 -1.442695, %v797_v27  ;;  %v815_v35 = vmul.f32 %v2178_v30, %v814_v28  ;;  %v809_v54 = vmul.f32 %v2178_v30, %v4125_v4 }
 0x4ef   : > { %v927_v27 = vstv %s926_s8  ;;  %s1660_s8 = sadd.s32 13, %s4078_s26 }
 0x4f0   : > { %3537 = vpow2.f32 %v2179_v33  ;;  %v816_v38 = vmul.f32 %v796_v32, %v792_v25  ;;  %v806_v39 = vmul.f32 %v805_v37, %v796_v32  ;;  %v810_v62 = vadd.f32 %v809_v54, %v808_v57  ;;  %s1661_s12 = sld [smem:[#allocation11 + %s1660_s8]] }
 0x4f2   : > { %v817_v42 = vadd.f32 %v816_v38, %v815_v35  ;;  %v807_v43 = vadd.f32 %v2178_v30, %v806_v39  ;;  %v913_v38 = vmul.f32 %v810_v62, %v4127_v5 }
 0x4f4   : > { %818 = vst [vmem:[%s3999_s10 + $0x4] sm:$0x1] %v817_v42  ;;  %2695 = vmatmul.mubr.f32.vlgmr.msra.gmra.mrb[4].mxu1 %v807_v43  ;;  %v916_v47 = vsub.f32 %v817_v42, %v4080_v31  ;;  %v893_v48 = vsub.f32 %v4080_v31, %v817_v42  ;;  %v909_v61 = vmul.f32 %v807_v43, %v4091_v40 }
 0x4f5   : > { %3217 = vmatpush3.bf16.msra.mxu1 %v4006_v8  ;;  %2764 = vmatprep.mubr.msk.f32.mxu1 %vm3809_vm0, %v3810_v10 }
 0x4f6   : > { %3218 = vmatprep.subr.bf16.mxu1 %v3808_v7  ;;  %v894_v51 = vmul.f32 %v893_v48, %v4084_v34  ;;  %v917_v52 = vmul.f32 %v916_v47, %v4087_v36  ;;  %v910_v12 = vsub.f32 %v807_v43, %v909_v61 }
 0x4f8   : > { %v895_v58 = vadd.f32 %v894_v51, %v817_v42  ;;  %v918_v60 = vadd.f32 %v917_v52, %v4080_v31 }
 0x4f9   : > { %3220 = vmatpush3.bf16.msra.mxu1 %v4014_v11 }
 0x4fa   : > { %v3538_v44 = vpop.eup %3537  ;;  %3221 = vmatprep.subr.bf16.mxu1 %v3808_v7  ;;  %v919_v1 = vsub.f32 %v918_v60, %v4098_v50 }
 0x4fb   : > { %v801_v45 = vadd.f32 1.0, %v3538_v44 }
 0x4fd   : > { %3539 = vrcp.f32 %v801_v45  ;;  %3223 = vmatpush3.bf16.msra.mxu1 %v4020_v14 }
 0x4fe   : > { %3224 = vmatprep.subr.bf16.mxu1 %v3808_v7 }
 0x501   : > { %3226 = vmatpush3.bf16.msra.mxu1 %v4026_v17 }
 0x502   : > { %3227 = vmatprep.subr.bf16.mxu1 %v3808_v7 }
 0x505   : > { %3229 = vmatpush3.bf16.msra.mxu1 %v4032_v20 }
 0x506   : > { %3230 = vmatprep.subr.bf16.mxu1 %v3808_v7 }
 0x507   : > { %v3540_v46 = vpop.eup %3539 }
 0x508   : > { %819 = vst [vmem:[%s4001_s13 + $0x4] sm:$0x1] %v3540_v46 }
 0x509   : > { %3232 = vmatpush3.bf16.msra.mxu1 %v4038_v23 }
 0x50a   : > { %3233 = vmatprep.subr.bf16.mxu1 %v3808_v7 }
 0x50d   : > { %3235 = vmatpush3.bf16.msra.mxu1 %v4044_v26 }
 0x50e   : > { %3236 = vmatprep.subr.bf16.mxu1 %v3808_v7 }
 0x511   : > { %3238 = vmatpush3.bf16.msra.mxu1 %v4050_v29 }
 0x512   : > { %3263 = vmatprep.subr.bf16.mxu1 %v3808_v7 }
 0x5c7   : > { %v889_v53 = vpop.f32.mrb[4].mxu1 }
 0x5c8   : > { %v890_v55 = vadd.f32 %v889_v53, %v822_v49  ;;  %v2696_v56 = vpop.f32.mrb[5].mxu1 }
 0x5ca   : > { %v896_v59 = vmul.f32 %v890_v55, %v4093_v41 }
 0x5cc   : > { %v897_v63 = vadd.f32 %v896_v59, %v895_v58 }
 0x5ce   : > { %vm898_vm6 = vcmp.ge.f32.partialorder %v897_v63, %v810_v62  ;;  %v902_v0 = vsub.f32 %v897_v63, %v810_v62 }
 0x5cf   : > { %v2180_v2 = vsel %vm898_vm6, 1.0, %v3810_v10 }
 0x5d0   : > { %v901_v3 = vsub.f32 1.0, %v2180_v2  ;;  %v2181_v6 = vmul.f32 -1.442695, %v902_v0  ;;  %v920_v9 = vmul.f32 %v2180_v2, %v919_v1  ;;  %v914_v33 = vmul.f32 %v2180_v2, %v4125_v4 }
 0x5d1   : > { %v1032_v0 = vstv %s1031_s14  ;;  %s1765_s14 = sadd.s32 14, %s4078_s26 }
 0x5d2   : > { %3541 = vpow2.f32 %v2181_v6  ;;  %v921_v13 = vmul.f32 %v901_v3, %v897_v63  ;;  %v911_v15 = vmul.f32 %v910_v12, %v901_v3  ;;  %v915_v45 = vadd.f32 %v914_v33, %v913_v38  ;;  %s1766_s17 = sld [smem:[#allocation11 + %s1765_s14]] }
 0x5d4   : > { %v922_v16 = vadd.f32 %v921_v13, %v920_v9  ;;  %v912_v18 = vadd.f32 %v2180_v2, %v911_v15  ;;  %v1018_v13 = vmul.f32 %v915_v45, %v4127_v5 }
 0x5d6   : > { %923 = vst [vmem:[%s3999_s10 + $0x5] sm:$0x1] %v922_v16  ;;  %2730 = vmatmul.mubr.f32.vlgmr.msra.gmra.mrb[6].mxu0 %v912_v18  ;;  %v1021_v24 = vsub.f32 %v922_v16, %v4080_v31  ;;  %v998_v25 = vsub.f32 %v4080_v31, %v922_v16  ;;  %v1014_v44 = vmul.f32 %v912_v18, %v4091_v40 }
 0x5d7   : > { %3241 = vmatpush3.bf16.msra.mxu0 %v4006_v8  ;;  %2799 = vmatprep.mubr.msk.f32.mxu0 %vm3809_vm0, %v3810_v10 }
 0x5d8   : > { %3242 = vmatprep.subr.bf16.mxu0 %v3808_v7  ;;  %v999_v28 = vmul.f32 %v998_v25, %v4084_v34  ;;  %v1022_v30 = vmul.f32 %v1021_v24, %v4087_v36  ;;  %v1015_v54 = vsub.f32 %v912_v18, %v1014_v44 }
 0x5da   : > { %v1000_v39 = vadd.f32 %v999_v28, %v922_v16  ;;  %v1023_v43 = vadd.f32 %v1022_v30, %v4080_v31 }
 0x5db   : > { %3244 = vmatpush3.bf16.msra.mxu0 %v4014_v11 }
 0x5dc   : > { %v3542_v19 = vpop.eup %3541  ;;  %3245 = vmatprep.subr.bf16.mxu0 %v3808_v7  ;;  %v1024_v48 = vsub.f32 %v1023_v43, %v4098_v50 }
 0x5dd   : > { %v906_v21 = vadd.f32 1.0, %v3542_v19 }
 0x5df   : > { %3543 = vrcp.f32 %v906_v21  ;;  %3247 = vmatpush3.bf16.msra.mxu0 %v4020_v14 }
 0x5e0   : > { %3248 = vmatprep.subr.bf16.mxu0 %v3808_v7 }
 0x5e3   : > { %3250 = vmatpush3.bf16.msra.mxu0 %v4026_v17 }
 0x5e4   : > { %3251 = vmatprep.subr.bf16.mxu0 %v3808_v7 }
 0x5e7   : > { %3253 = vmatpush3.bf16.msra.mxu0 %v4032_v20 }
 0x5e8   : > { %3254 = vmatprep.subr.bf16.mxu0 %v3808_v7 }
 0x5e9   : > { %v3544_v22 = vpop.eup %3543 }
 0x5ea   : > { %924 = vst [vmem:[%s4001_s13 + $0x5] sm:$0x1] %v3544_v22 }
 0x5eb   : > { %3256 = vmatpush3.bf16.msra.mxu0 %v4038_v23 }
 0x5ec   : > { %3257 = vmatprep.subr.bf16.mxu0 %v3808_v7 }
 0x5ef   : > { %3259 = vmatpush3.bf16.msra.mxu0 %v4044_v26 }
 0x5f0   : > { %3260 = vmatprep.subr.bf16.mxu0 %v3808_v7 }
 0x5f3   : > { %3262 = vmatpush3.bf16.msra.mxu0 %v4050_v29 }
 0x5f4   : > { %3287 = vmatprep.subr.bf16.mxu0 %v3808_v7 }
 0x6a9   : > { %v994_v32 = vpop.f32.mrb[6].mxu0 }
 0x6aa   : > { %v995_v35 = vadd.f32 %v994_v32, %v927_v27  ;;  %v2731_v37 = vpop.f32.mrb[7].mxu0 }
 0x6ac   : > { %v1001_v42 = vmul.f32 %v995_v35, %v4093_v41 }
 0x6ae   : > { %v1002_v46 = vadd.f32 %v1001_v42, %v1000_v39 }
 0x6b0   : > { %vm1003_vm7 = vcmp.ge.f32.partialorder %v1002_v46, %v915_v45  ;;  %v1007_v47 = vsub.f32 %v1002_v46, %v915_v45 }
 0x6b1   : > { %v2182_v49 = vsel %vm1003_vm7, 1.0, %v3810_v10 }
 0x6b2   : > { %v1006_v51 = vsub.f32 1.0, %v2182_v49  ;;  %v2183_v52 = vmul.f32 -1.442695, %v1007_v47  ;;  %v1025_v53 = vmul.f32 %v2182_v49, %v1024_v48  ;;  %v1019_v6 = vmul.f32 %v2182_v49, %v4125_v4 }
 0x6b3   : > { %v1137_v47 = vstv %s1136_s25  ;;  %s1870_s25 = sadd.s32 15, %s4078_s26 }
 0x6b4   : > { %3545 = vpow2.f32 %v2183_v52  ;;  %v1026_v55 = vmul.f32 %v1006_v51, %v1002_v46  ;;  %v1016_v56 = vmul.f32 %v1015_v54, %v1006_v51  ;;  %v1020_v21 = vadd.f32 %v1019_v6, %v1018_v13  ;;  %s1871_s6 = sld [smem:[#allocation11 + %s1870_s25]] }
 0x6b6   : > { %v1027_v57 = vadd.f32 %v1026_v55, %v1025_v53  ;;  %v1017_v58 = vadd.f32 %v2182_v49, %v1016_v56  ;;  %v1123_v55 = vmul.f32 %v1020_v21, %v4127_v5 }
 0x6b8   : > { %1028 = vst [vmem:[%s3999_s10 + $0x6] sm:$0x1] %v1027_v57  ;;  %2765 = vmatmul.mubr.f32.vlgmr.msra.gmra.mrb[6].mxu1 %v1017_v58  ;;  %v1126_v62 = vsub.f32 %v1027_v57, %v4080_v31  ;;  %v1103_v63 = vsub.f32 %v4080_v31, %v1027_v57  ;;  %v1119_v19 = vmul.f32 %v1017_v58, %v4091_v40 }
 0x6b9   : > { %3265 = vmatpush3.bf16.msra.mxu1 %v4006_v8  ;;  %2834 = vmatprep.mubr.msk.f32.mxu1 %vm3809_vm0, %v3810_v10 }
 0x6ba   : > { %3266 = vmatprep.subr.bf16.mxu1 %v3808_v7  ;;  %v1104_v1 = vmul.f32 %v1103_v63, %v4084_v34  ;;  %v1127_v2 = vmul.f32 %v1126_v62, %v4087_v36  ;;  %v1120_v33 = vsub.f32 %v1017_v58, %v1119_v19 }
 0x6bc   : > { %v1105_v15 = vadd.f32 %v1104_v1, %v1027_v57  ;;  %v1128_v18 = vadd.f32 %v1127_v2, %v4080_v31 }
 0x6bd   : > { %3268 = vmatpush3.bf16.msra.mxu1 %v4014_v11 }
 0x6be   : > { %v3546_v59 = vpop.eup %3545  ;;  %3269 = vmatprep.subr.bf16.mxu1 %v3808_v7  ;;  %v1129_v25 = vsub.f32 %v1128_v18, %v4098_v50 }
 0x6bf   : > { %v1011_v60 = vadd.f32 1.0, %v3546_v59 }
 0x6c1   : > { %3547 = vrcp.f32 %v1011_v60  ;;  %3271 = vmatpush3.bf16.msra.mxu1 %v4020_v14 }
 0x6c2   : > { %3272 = vmatprep.subr.bf16.mxu1 %v3808_v7 }
 0x6c5   : > { %3274 = vmatpush3.bf16.msra.mxu1 %v4026_v17 }
 0x6c6   : > { %3275 = vmatprep.subr.bf16.mxu1 %v3808_v7 }
 0x6c9   : > { %3277 = vmatpush3.bf16.msra.mxu1 %v4032_v20 }
 0x6ca   : > { %3278 = vmatprep.subr.bf16.mxu1 %v3808_v7 }
 0x6cb   : > { %v3548_v61 = vpop.eup %3547 }
 0x6cc   : > { %1029 = vst [vmem:[%s4001_s13 + $0x6] sm:$0x1] %v3548_v61 }
 0x6cd   : > { %3280 = vmatpush3.bf16.msra.mxu1 %v4038_v23 }
 0x6ce   : > { %3281 = vmatprep.subr.bf16.mxu1 %v3808_v7 }
 0x6d1   : > { %3283 = vmatpush3.bf16.msra.mxu1 %v4044_v26 }
 0x6d2   : > { %3284 = vmatprep.subr.bf16.mxu1 %v3808_v7 }
 0x6d5   : > { %3286 = vmatpush3.bf16.msra.mxu1 %v4050_v29 }
 0x6d6   : > { %3311 = vmatprep.subr.bf16.mxu1 %v3808_v7 }
 0x78b   : > { %v1099_v3 = vpop.f32.mrb[6].mxu1 }
 0x78c   : > { %v1100_v9 = vadd.f32 %v1099_v3, %v1032_v0  ;;  %v2766_v12 = vpop.f32.mrb[7].mxu1 }
 0x78e   : > { %v1106_v16 = vmul.f32 %v1100_v9, %v4093_v41 }
 0x790   : > { %v1107_v22 = vadd.f32 %v1106_v16, %v1105_v15 }
 0x792   : > { %vm1108_vm8 = vcmp.ge.f32.partialorder %v1107_v22, %v1020_v21  ;;  %v1112_v24 = vsub.f32 %v1107_v22, %v1020_v21 }
 0x793   : > { %v2184_v27 = vsel %vm1108_vm8, 1.0, %v3810_v10 }
 0x794   : > { %v1111_v28 = vsub.f32 1.0, %v2184_v27  ;;  %v2185_v30 = vmul.f32 -1.442695, %v1112_v24  ;;  %v1130_v32 = vmul.f32 %v2184_v27, %v1129_v25  ;;  %v1124_v52 = vmul.f32 %v2184_v27, %v4125_v4 }
 0x795   : > { %v1242_v24 = vstv %s1241_s9 }
 0x796   : > { %3549 = vpow2.f32 %v2185_v30  ;;  %v1131_v35 = vmul.f32 %v1111_v28, %v1107_v22  ;;  %v1121_v37 = vmul.f32 %v1120_v33, %v1111_v28  ;;  %v1125_v60 = vadd.f32 %v1124_v52, %v1123_v55 }
 0x798   : > { %v1132_v38 = vadd.f32 %v1131_v35, %v1130_v32  ;;  %v1122_v39 = vadd.f32 %v2184_v27, %v1121_v37  ;;  %v1228_v35 = vmul.f32 %v1125_v60, %v4127_v5 }
 0x79a   : > { %1133 = vst [vmem:[%s3999_s10 + $0x7] sm:$0x1] %v1132_v38  ;;  %2800 = vmatmul.mubr.f32.vlgmr.msra.gmra.mrb[8].mxu0 %v1122_v39  ;;  %v1231_v45 = vsub.f32 %v1132_v38, %v4080_v31  ;;  %v1208_v46 = vsub.f32 %v4080_v31, %v1132_v38  ;;  %v1224_v59 = vmul.f32 %v1122_v39, %v4091_v40 }
 0x79b   : > { %3289 = vmatpush3.bf16.msra.mxu0 %v4006_v8  ;;  %2869 = vmatprep.mubr.msk.f32.mxu0 %vm3809_vm0, %v3810_v10 }
 0x79c   : > { %3290 = vmatprep.subr.bf16.mxu0 %v3808_v7  ;;  %v1209_v48 = vmul.f32 %v1208_v46, %v4084_v34  ;;  %v1232_v49 = vmul.f32 %v1231_v45, %v4087_v36  ;;  %v1225_v6 = vsub.f32 %v1122_v39, %v1224_v59  ;;  %v4390_v39 = vld [vmem:[#allocation9] sm:$0x1] }
 0x79e   : > { %v1210_v56 = vadd.f32 %v1209_v48, %v1132_v38  ;;  %v1233_v58 = vadd.f32 %v1232_v49, %v4080_v31 }
 0x79f   : > { %3292 = vmatpush3.bf16.msra.mxu0 %v4014_v11 }
 0x7a0   : > { %v3550_v42 = vpop.eup %3549  ;;  %3293 = vmatprep.subr.bf16.mxu0 %v3808_v7  ;;  %v1234_v63 = vsub.f32 %v1233_v58, %v4098_v50  ;;  %v4419_v58 = vld [vmem:[#allocation9 + $0x1] sm:$0x1] }
 0x7a1   : > { %v1116_v43 = vadd.f32 1.0, %v3550_v42 }
 0x7a3   : > { %3551 = vrcp.f32 %v1116_v43  ;;  %3295 = vmatpush3.bf16.msra.mxu0 %v4020_v14 }
 0x7a4   : > { %3296 = vmatprep.subr.bf16.mxu0 %v3808_v7 }
 0x7a7   : > { %3298 = vmatpush3.bf16.msra.mxu0 %v4026_v17 }
 0x7a8   : > { %3299 = vmatprep.subr.bf16.mxu0 %v3808_v7 }
 0x7ab   : > { %3301 = vmatpush3.bf16.msra.mxu0 %v4032_v20 }
 0x7ac   : > { %3302 = vmatprep.subr.bf16.mxu0 %v3808_v7 }
 0x7ad   : > { %v3552_v44 = vpop.eup %3551 }
 0x7ae   : > { %1134 = vst [vmem:[%s4001_s13 + $0x7] sm:$0x1] %v3552_v44 }
 0x7af   : > { %3304 = vmatpush3.bf16.msra.mxu0 %v4038_v23 }
 0x7b0   : > { %3305 = vmatprep.subr.bf16.mxu0 %v3808_v7 }
 0x7b3   : > { %3307 = vmatpush3.bf16.msra.mxu0 %v4044_v26 }
 0x7b4   : > { %3308 = vmatprep.subr.bf16.mxu0 %v3808_v7 }
 0x7b7   : > { %3310 = vmatpush3.bf16.msra.mxu0 %v4050_v29 }
 0x7b8   : > { %3335 = vmatprep.subr.bf16.mxu0 %v3808_v7 }
 0x86d   : > { %v1204_v51 = vpop.f32.mrb[8].mxu0 }
 0x86e   : > { %v1205_v53 = vadd.f32 %v1204_v51, %v1137_v47  ;;  %v2801_v54 = vpop.f32.mrb[9].mxu0 }
 0x870   : > { %v1211_v57 = vmul.f32 %v1205_v53, %v4093_v41 }
 0x872   : > { %v1212_v61 = vadd.f32 %v1211_v57, %v1210_v56  ;;  %v1347_v57 = vstv %s1346_s7 }
 0x874   : > { %vm1213_vm9 = vcmp.ge.f32.partialorder %v1212_v61, %v1125_v60  ;;  %v1217_v62 = vsub.f32 %v1212_v61, %v1125_v60  ;;  %v4422_v60 = vld [vmem:[#allocation9 + $0x6] sm:$0x1] }
 0x875   : > { %v2186_v0 = vsel %vm1213_vm9, 1.0, %v3810_v10 }
 0x876   : > { %v1216_v1 = vsub.f32 1.0, %v2186_v0  ;;  %v2187_v2 = vmul.f32 -1.442695, %v1217_v62  ;;  %v1235_v3 = vmul.f32 %v2186_v0, %v1234_v63  ;;  %v1229_v30 = vmul.f32 %v2186_v0, %v4125_v4 }
 0x878   : > { %3553 = vpow2.f32 %v2187_v2  ;;  %v1236_v9 = vmul.f32 %v1216_v1, %v1212_v61  ;;  %v1226_v12 = vmul.f32 %v1225_v6, %v1216_v1  ;;  %v4427_v6 = vld [vmem:[#allocation9 + $0x2] sm:$0x1] }
 0x87a   : > { %v1237_v13 = vadd.f32 %v1236_v9, %v1235_v3  ;;  %v1227_v15 = vadd.f32 %v2186_v0, %v1226_v12 }
 0x87c   : > { %1238 = vst [vmem:[%s3999_s10 + $0x8] sm:$0x1] %v1237_v13  ;;  %2835 = vmatmul.mubr.f32.vlgmr.msra.gmra.mrb[8].mxu1 %v1227_v15  ;;  %v1336_v21 = vsub.f32 %v1237_v13, %v4080_v31  ;;  %v1313_v22 = vsub.f32 %v4080_v31, %v1237_v13  ;;  %v1329_v31 = vmul.f32 %v1227_v15, %v4091_v40 }
 0x87d   : > { %3313 = vmatpush3.bf16.msra.mxu1 %v4006_v8  ;;  %2904 = vmatprep.mubr.msk.f32.mxu1 %vm3809_vm0, %v3810_v10 }
 0x87e   : > { %3314 = vmatprep.subr.bf16.mxu1 %v3808_v7  ;;  %v1314_v25 = vmul.f32 %v1313_v22, %v4084_v34  ;;  %v1337_v27 = vmul.f32 %v1336_v21, %v4087_v36  ;;  %v1230_v34 = vadd.f32 %v1229_v30, %v1228_v35  ;;  %v1330_v49 = vsub.f32 %v1227_v15, %v1329_v31 }
 0x880   : > { %v1315_v37 = vadd.f32 %v1314_v25, %v1237_v13  ;;  %v1338_v42 = vadd.f32 %v4390_v39, %v1337_v27  ;;  %v1333_v2 = vmul.f32 %v1230_v34, %v4127_v5  ;;  %v4431_v13 = vld [vmem:[#allocation9 + $0x3] sm:$0x1] }
 0x881   : > { %3316 = vmatpush3.bf16.msra.mxu1 %v4014_v11 }
 0x882   : > { %v3554_v16 = vpop.eup %3553  ;;  %3317 = vmatprep.subr.bf16.mxu1 %v3808_v7  ;;  %v1339_v44 = vsub.f32 %v1338_v42, %v4098_v50 }
 0x883   : > { %v1221_v18 = vadd.f32 1.0, %v3554_v16 }
 0x885   : > { %3555 = vrcp.f32 %v1221_v18  ;;  %3319 = vmatpush3.bf16.msra.mxu1 %v4020_v14 }
 0x886   : > { %3320 = vmatprep.subr.bf16.mxu1 %v3808_v7 }
 0x889   : > { %3322 = vmatpush3.bf16.msra.mxu1 %v4026_v17 }
 0x88a   : > { %3323 = vmatprep.subr.bf16.mxu1 %v3808_v7 }
 0x88d   : > { %3325 = vmatpush3.bf16.msra.mxu1 %v4032_v20 }
 0x88e   : > { %3326 = vmatprep.subr.bf16.mxu1 %v3808_v7 }
 0x88f   : > { %v3556_v19 = vpop.eup %3555 }
 0x890   : > { %1239 = vst [vmem:[%s4001_s13 + $0x8] sm:$0x1] %v3556_v19  ;;  %v4434_v19 = vld [vmem:[#allocation9 + $0x7] sm:$0x1] }
 0x891   : > { %3328 = vmatpush3.bf16.msra.mxu1 %v4038_v23 }
 0x892   : > { %3329 = vmatprep.subr.bf16.mxu1 %v3808_v7 }
 0x895   : > { %3331 = vmatpush3.bf16.msra.mxu1 %v4044_v26 }
 0x896   : > { %3332 = vmatprep.subr.bf16.mxu1 %v3808_v7 }
 0x899   : > { %3334 = vmatpush3.bf16.msra.mxu1 %v4050_v29 }
 0x89a   : > { %3359 = vmatprep.subr.bf16.mxu1 %v3808_v7 }
 0x94f   : > { %v1309_v28 = vpop.f32.mrb[8].mxu1 }
 0x950   : > { %v1310_v32 = vadd.f32 %v1309_v28, %v1242_v24  ;;  %v2836_v33 = vpop.f32.mrb[9].mxu1 }
 0x952   : > { %v1316_v38 = vmul.f32 %v1310_v32, %v4093_v41 }
 0x954   : > { %v1317_v43 = vadd.f32 %v1316_v38, %v1315_v37 }
 0x956   : > { %vm1318_vm10 = vcmp.ge.f32.partialorder %v1317_v43, %v1230_v34  ;;  %v1322_v36 = vsub.f32 %v1317_v43, %v1230_v34  ;;  %v1452_v34 = vstv %s1451_s23 }
 0x957   : > { %v2188_v45 = vsel %vm1318_vm10, 1.0, %v3810_v10 }
 0x958   : > { %v1321_v46 = vsub.f32 1.0, %v2188_v45  ;;  %v2189_v47 = vmul.f32 -1.442695, %v1322_v36  ;;  %v1340_v48 = vmul.f32 %v2188_v45, %v1339_v44  ;;  %v1334_v63 = vmul.f32 %v2188_v45, %v4125_v4 }
 0x95a   : > { %3557 = vpow2.f32 %v2189_v47  ;;  %v1341_v41 = vmul.f32 %v1321_v46, %v1317_v43  ;;  %v1331_v51 = vmul.f32 %v1330_v49, %v1321_v46  ;;  %v1335_v16 = vadd.f32 %v1334_v63, %v1333_v2  ;;  %v4466_v49 = vld [vmem:[#allocation9 + $0x4] sm:$0x1] }
 0x95c   : > { %v1342_v52 = vadd.f32 %v1341_v41, %v1340_v48  ;;  %v1332_v53 = vadd.f32 %v2188_v45, %v1331_v51  ;;  %v4463_v45 = vld [vmem:[#allocation9 + $0x5] sm:$0x1]  ;;  %v1438_v41 = vmul.f32 %v4466_v49, %v1335_v16 }
 0x95e   : > { %1343 = vst [vmem:[%s3999_s10 + $0x9] sm:$0x1] %v1342_v52  ;;  %2870 = vmatmul.mubr.f32.vlgmr.msra.gmra.mrb[10].mxu0 %v1332_v53  ;;  %v1441_v55 = vsub.f32 %v1342_v52, %v4390_v39  ;;  %v1418_v56 = vsub.f32 %v4390_v39, %v1342_v52  ;;  %v1434_v15 = vmul.f32 %v4431_v13, %v1332_v53 }
 0x95f   : > { %3337 = vmatpush3.bf16.msra.mxu0 %v4006_v8  ;;  %2939 = vmatprep.mubr.msk.f32.mxu0 %vm3809_vm0, %v3810_v10 }
 0x960   : > { %3338 = vmatprep.subr.bf16.mxu0 %v3808_v7  ;;  %v1419_v59 = vmul.f32 %v4419_v58, %v1418_v56  ;;  %v1442_v61 = vmul.f32 %v4422_v60, %v1441_v55  ;;  %v1435_v27 = vsub.f32 %v1332_v53, %v1434_v15 }
 0x962   : > { %v1420_v3 = vadd.f32 %v1419_v59, %v1342_v52  ;;  %v1443_v12 = vadd.f32 %v4390_v39, %v1442_v61 }
 0x963   : > { %3340 = vmatpush3.bf16.msra.mxu0 %v4014_v11 }
 0x964   : > { %v3558_v40 = vpop.eup %3557  ;;  %3341 = vmatprep.subr.bf16.mxu0 %v3808_v7  ;;  %v1444_v5 = vsub.f32 %v1443_v12, %v4434_v19 }
 0x965   : > { %v1326_v50 = vadd.f32 1.0, %v3558_v40 }
 0x967   : > { %3559 = vrcp.f32 %v1326_v50  ;;  %3343 = vmatpush3.bf16.msra.mxu0 %v4020_v14 }
 0x968   : > { %3344 = vmatprep.subr.bf16.mxu0 %v3808_v7 }
 0x96b   : > { %3346 = vmatpush3.bf16.msra.mxu0 %v4026_v17 }
 0x96c   : > { %3347 = vmatprep.subr.bf16.mxu0 %v3808_v7 }
 0x96f   : > { %3349 = vmatpush3.bf16.msra.mxu0 %v4032_v20 }
 0x970   : > { %3350 = vmatprep.subr.bf16.mxu0 %v3808_v7 }
 0x971   : > { %v3560_v54 = vpop.eup %3559 }
 0x972   : > { %1344 = vst [vmem:[%s4001_s13 + $0x9] sm:$0x1] %v3560_v54 }
 0x973   : > { %3352 = vmatpush3.bf16.msra.mxu0 %v4038_v23 }
 0x974   : > { %3353 = vmatprep.subr.bf16.mxu0 %v3808_v7 }
 0x977   : > { %3355 = vmatpush3.bf16.msra.mxu0 %v4044_v26 }
 0x978   : > { %3356 = vmatprep.subr.bf16.mxu0 %v3808_v7 }
 0x97b   : > { %3358 = vmatpush3.bf16.msra.mxu0 %v4050_v29 }
 0x97c   : > { %3383 = vmatprep.subr.bf16.mxu0 %v3808_v7 }
 0xa31   : > { %v1414_v62 = vpop.f32.mrb[10].mxu0 }
 0xa32   : > { %v1415_v0 = vadd.f32 %v1414_v62, %v1347_v57  ;;  %v2871_v1 = vpop.f32.mrb[11].mxu0 }
 0xa34   : > { %v1421_v9 = vmul.f32 %v4427_v6, %v1415_v0 }
 0xa36   : > { %v1422_v18 = vadd.f32 %v1421_v9, %v1420_v3 }
 0xa38   : > { %vm1423_vm11 = vcmp.ge.f32.partialorder %v1422_v18, %v1335_v16  ;;  %v1427_v4 = vsub.f32 %v1422_v18, %v1335_v16 }
 0xa39   : > { %v2190_v21 = vsel %vm1423_vm11, 1.0, %v3810_v10 }
 0xa3a   : > { %v1426_v22 = vsub.f32 1.0, %v2190_v21  ;;  %v2191_v24 = vmul.f32 -1.442695, %v1427_v4  ;;  %v1445_v25 = vmul.f32 %v2190_v21, %v1444_v5  ;;  %v1439_v46 = vmul.f32 %v4463_v45, %v2190_v21 }
 0xa3b   : > { %v1557_v4 = vstv %s1556_s16 }
 0xa3c   : > { %3561 = vpow2.f32 %v2191_v24  ;;  %v1446_v28 = vmul.f32 %v1426_v22, %v1422_v18  ;;  %v1436_v30 = vmul.f32 %v1435_v27, %v1426_v22  ;;  %v1440_v50 = vadd.f32 %v1439_v46, %v1438_v41 }
 0xa3e   : > { %v1447_v32 = vadd.f32 %v1446_v28, %v1445_v25  ;;  %v1437_v33 = vadd.f32 %v2190_v21, %v1436_v30  ;;  %v1543_v28 = vmul.f32 %v4466_v49, %v1440_v50 }
 0xa40   : > { %1448 = vst [vmem:[%s3999_s10 + $0xa] sm:$0x1] %v1447_v32  ;;  %2905 = vmatmul.mubr.f32.vlgmr.msra.gmra.mrb[10].mxu1 %v1437_v33  ;;  %v1546_v42 = vsub.f32 %v1447_v32, %v4390_v39  ;;  %v1523_v31 = vsub.f32 %v4390_v39, %v1447_v32  ;;  %v1539_v40 = vmul.f32 %v4431_v13, %v1437_v33 }
 0xa41   : > { %3361 = vmatpush3.bf16.msra.mxu1 %v4006_v8  ;;  %2974 = vmatprep.mubr.msk.f32.mxu1 %vm3809_vm0, %v3810_v10 }
 0xa42   : > { %3362 = vmatprep.subr.bf16.mxu1 %v3808_v7  ;;  %v1524_v43 = vmul.f32 %v4419_v58, %v1523_v31  ;;  %v1547_v36 = vmul.f32 %v4422_v60, %v1546_v42  ;;  %v1540_v63 = vsub.f32 %v1437_v33, %v1539_v40 }
 0xa44   : > { %v1525_v51 = vadd.f32 %v1524_v43, %v1447_v32  ;;  %v1548_v53 = vadd.f32 %v4390_v39, %v1547_v36 }
 0xa45   : > { %3364 = vmatpush3.bf16.msra.mxu1 %v4014_v11 }
 0xa46   : > { %v3562_v35 = vpop.eup %3561  ;;  %3365 = vmatprep.subr.bf16.mxu1 %v3808_v7  ;;  %v1549_v56 = vsub.f32 %v1548_v53, %v4434_v19 }
 0xa47   : > { %v1431_v37 = vadd.f32 1.0, %v3562_v35 }
 0xa49   : > { %3563 = vrcp.f32 %v1431_v37  ;;  %3367 = vmatpush3.bf16.msra.mxu1 %v4020_v14 }
 0xa4a   : > { %3368 = vmatprep.subr.bf16.mxu1 %v3808_v7 }
 0xa4d   : > { %3370 = vmatpush3.bf16.msra.mxu1 %v4026_v17 }
 0xa4e   : > { %3371 = vmatprep.subr.bf16.mxu1 %v3808_v7 }
 0xa51   : > { %3373 = vmatpush3.bf16.msra.mxu1 %v4032_v20 }
 0xa52   : > { %3374 = vmatprep.subr.bf16.mxu1 %v3808_v7 }
 0xa53   : > { %v3564_v38 = vpop.eup %3563 }
 0xa54   : > { %1449 = vst [vmem:[%s4001_s13 + $0xa] sm:$0x1] %v3564_v38 }
 0xa55   : > { %3376 = vmatpush3.bf16.msra.mxu1 %v4038_v23 }
 0xa56   : > { %3377 = vmatprep.subr.bf16.mxu1 %v3808_v7 }
 0xa59   : > { %3379 = vmatpush3.bf16.msra.mxu1 %v4044_v26 }
 0xa5a   : > { %3380 = vmatprep.subr.bf16.mxu1 %v3808_v7 }
 0xa5d   : > { %3382 = vmatpush3.bf16.msra.mxu1 %v4050_v29 }
 0xa5e   : > { %3407 = vmatprep.subr.bf16.mxu1 %v3808_v7 }
 0xb13   : > { %v1519_v44 = vpop.f32.mrb[10].mxu1 }
 0xb14   : > { %v1520_v47 = vadd.f32 %v1519_v44, %v1452_v34  ;;  %v2906_v48 = vpop.f32.mrb[11].mxu1 }
 0xb16   : > { %v1526_v52 = vmul.f32 %v4427_v6, %v1520_v47 }
 0xb18   : > { %v1527_v54 = vadd.f32 %v1526_v52, %v1525_v51 }
 0xb1a   : > { %vm1528_vm12 = vcmp.ge.f32.partialorder %v1527_v54, %v1440_v50  ;;  %v1532_v55 = vsub.f32 %v1527_v54, %v1440_v50 }
 0xb1b   : > { %v2192_v57 = vsel %vm1528_vm12, 1.0, %v3810_v10 }
 0xb1c   : > { %v1531_v59 = vsub.f32 1.0, %v2192_v57  ;;  %v2193_v61 = vmul.f32 -1.442695, %v1532_v55  ;;  %v1550_v62 = vmul.f32 %v2192_v57, %v1549_v56  ;;  %v1544_v24 = vmul.f32 %v4463_v45, %v2192_v57 }
 0xb1e   : > { %3565 = vpow2.f32 %v2193_v61  ;;  %v1551_v0 = vmul.f32 %v1531_v59, %v1527_v54  ;;  %v1541_v1 = vmul.f32 %v1540_v63, %v1531_v59  ;;  %v1545_v37 = vadd.f32 %v1544_v24, %v1543_v28 }
 0xb20   : > { %v1552_v2 = vadd.f32 %v1551_v0, %v1550_v62  ;;  %v1542_v3 = vadd.f32 %v2192_v57, %v1541_v1 }
 0xb22   : > { %1553 = vst [vmem:[%s3999_s10 + $0xb] sm:$0x1] %v1552_v2  ;;  %2940 = vmatmul.mubr.f32.vlgmr.msra.gmra.mrb[12].mxu0 %v1542_v3  ;;  %v1651_v16 = vsub.f32 %v1552_v2, %v4390_v39  ;;  %v1628_v18 = vsub.f32 %v4390_v39, %v1552_v2  ;;  %v1644_v35 = vmul.f32 %v4431_v13, %v1542_v3 }
 0xb23   : > { %3385 = vmatpush3.bf16.msra.mxu0 %v4006_v8  ;;  %3009 = vmatprep.mubr.msk.f32.mxu0 %vm3809_vm0, %v3810_v10 }
 0xb24   : > { %3386 = vmatprep.subr.bf16.mxu0 %v3808_v7  ;;  %v1629_v5 = vmul.f32 %v4419_v58, %v1628_v18  ;;  %v1652_v21 = vmul.f32 %v4422_v60, %v1651_v16  ;;  %v1645_v46 = vsub.f32 %v1542_v3, %v1644_v35 }
 0xb26   : > { %v1630_v30 = vadd.f32 %v1629_v5, %v1552_v2  ;;  %v1653_v33 = vadd.f32 %v4390_v39, %v1652_v21 }
 0xb27   : > { %3388 = vmatpush3.bf16.msra.mxu0 %v4014_v11 }
 0xb28   : > { %v3566_v9 = vpop.eup %3565  ;;  %3389 = vmatprep.subr.bf16.mxu0 %v3808_v7  ;;  %v1654_v31 = vsub.f32 %v1653_v33, %v4434_v19 }
 0xb29   : > { %v1536_v12 = vadd.f32 1.0, %v3566_v9 }
 0xb2b   : > { %3567 = vrcp.f32 %v1536_v12  ;;  %3391 = vmatpush3.bf16.msra.mxu0 %v4020_v14 }
 0xb2c   : > { %3392 = vmatprep.subr.bf16.mxu0 %v3808_v7 }
 0xb2f   : > { %3394 = vmatpush3.bf16.msra.mxu0 %v4026_v17 }
 0xb30   : > { %3395 = vmatprep.subr.bf16.mxu0 %v3808_v7 }
 0xb33   : > { %3397 = vmatpush3.bf16.msra.mxu0 %v4032_v20 }
 0xb34   : > { %3398 = vmatprep.subr.bf16.mxu0 %v3808_v7 }
 0xb35   : > { %v3568_v15 = vpop.eup %3567 }
 0xb36   : > { %1554 = vst [vmem:[%s4001_s13 + $0xb] sm:$0x1] %v3568_v15 }
 0xb37   : > { %3400 = vmatpush3.bf16.msra.mxu0 %v4038_v23 }
 0xb38   : > { %3401 = vmatprep.subr.bf16.mxu0 %v3808_v7 }
 0xb3b   : > { %3403 = vmatpush3.bf16.msra.mxu0 %v4044_v26 }
 0xb3c   : > { %3404 = vmatprep.subr.bf16.mxu0 %v3808_v7 }
 0xb3f   : > { %3406 = vmatpush3.bf16.msra.mxu0 %v4050_v29 }
 0xbf5   : > { %v1624_v22 = vpop.f32.mrb[12].mxu0 }
 0xbf6   : > { %v1625_v25 = vadd.f32 %v1624_v22, %v1557_v4  ;;  %v2941_v27 = vpop.f32.mrb[13].mxu0 }
 0xbf8   : > { %v1631_v32 = vmul.f32 %v4427_v6, %v1625_v25  ;;  %v1767_v25 = vstv %s1766_s17 }
 0xbfa   : > { %v1632_v38 = vadd.f32 %v1631_v32, %v1630_v30 }
 0xbfc   : > { %vm1633_vm13 = vcmp.ge.f32.partialorder %v1632_v38, %v1545_v37  ;;  %v1637_v42 = vsub.f32 %v1632_v38, %v1545_v37 }
 0xbfd   : > { %v2194_v34 = vsel %vm1633_vm13, 1.0, %v3810_v10 }
 0xbfe   : > { %v1636_v43 = vsub.f32 1.0, %v2194_v34  ;;  %v2195_v36 = vmul.f32 -1.442695, %v1637_v42  ;;  %v1655_v44 = vmul.f32 %v2194_v34, %v1654_v31  ;;  %v1649_v50 = vmul.f32 %v4463_v45, %v2194_v34 }
 0xc00   : > { %3569 = vpow2.f32 %v2195_v36  ;;  %v1656_v47 = vmul.f32 %v1636_v43, %v1632_v38  ;;  %v1646_v48 = vmul.f32 %v1645_v46, %v1636_v43 }
 0xc02   : > { %v1657_v41 = vadd.f32 %v1656_v47, %v1655_v44  ;;  %v1647_v51 = vadd.f32 %v2194_v34, %v1646_v48 }
 0xc04   : > { %1658 = vst [vmem:[%s3999_s10 + $0xc] sm:$0x1] %v1657_v41  ;;  %2975 = vmatmul.mubr.f32.vlgmr.msra.gmra.mrb[12].mxu1 %v1647_v51  ;;  %v1749_v57 = vmul.f32 %v4431_v13, %v1647_v51 }
 0xc05   : > { %3409 = vmatpush3.bf16.msra.mxu1 %v4006_v8  ;;  %3044 = vmatprep.mubr.msk.f32.mxu1 %vm3809_vm0, %v3810_v10 }
 0xc06   : > { %3410 = vmatprep.subr.bf16.mxu1 %v3808_v7  ;;  %v1750_v9 = vsub.f32 %v1647_v51, %v1749_v57 }
 0xc09   : > { %3412 = vmatpush3.bf16.msra.mxu1 %v4014_v11  ;;  %v1756_v11 = vsub.f32 %v1657_v41, %v4390_v39 }
 0xc0a   : > { %v3570_v52 = vpop.eup %3569  ;;  %3413 = vmatprep.subr.bf16.mxu1 %v3808_v7 }
 0xc0b   : > { %v1641_v53 = vadd.f32 1.0, %v3570_v52  ;;  %v1757_v40 = vmul.f32 %v4422_v60, %v1756_v11 }
 0xc0d   : > { %3571 = vrcp.f32 %v1641_v53  ;;  %3415 = vmatpush3.bf16.msra.mxu1 %v4020_v14  ;;  %v1733_v14 = vsub.f32 %v4390_v39, %v1657_v41  ;;  %v1758_v56 = vadd.f32 %v4390_v39, %v1757_v40 }
 0xc0e   : > { %3416 = vmatprep.subr.bf16.mxu1 %v3808_v7 }
 0xc0f   : > { %v1759_v63 = vsub.f32 %v1758_v56, %v4434_v19 }
 0xc11   : > { %3418 = vmatpush3.bf16.msra.mxu1 %v4026_v17  ;;  %v1662_v17 = vstv %s1661_s12 }
 0xc12   : > { %3419 = vmatprep.subr.bf16.mxu1 %v3808_v7 }
 0xc15   : > { %3421 = vmatpush3.bf16.msra.mxu1 %v4032_v20  ;;  %v1734_v20 = vmul.f32 %v4419_v58, %v1733_v14 }
 0xc16   : > { %3422 = vmatprep.subr.bf16.mxu1 %v3808_v7 }
 0xc17   : > { %v3572_v8 = vpop.eup %3571  ;;  %v1735_v55 = vadd.f32 %v1734_v20, %v1657_v41 }
 0xc18   : > { %1659 = vst [vmem:[%s4001_s13 + $0xc] sm:$0x1] %v3572_v8 }
 0xc19   : > { %3424 = vmatpush3.bf16.msra.mxu1 %v4038_v23 }
 0xc1a   : > { %3425 = vmatprep.subr.bf16.mxu1 %v3808_v7 }
 0xc1d   : > { %3427 = vmatpush3.bf16.msra.mxu1 %v4044_v26 }
 0xc1e   : > { %3428 = vmatprep.subr.bf16.mxu1 %v3808_v7  ;;  %v1648_v7 = vmul.f32 %v4466_v49, %v1545_v37 }
 0xc20   : > { %v1650_v59 = vadd.f32 %v1649_v50, %v1648_v7 }
 0xc21   : > { %3430 = vmatpush3.bf16.msra.mxu1 %v4050_v29 }
 0xc22   : > { %v1753_v37 = vmul.f32 %v4466_v49, %v1650_v59 }
 0xcd7   : > { %v1729_v23 = vpop.f32.mrb[12].mxu1 }
 0xcd8   : > { %v1730_v54 = vadd.f32 %v1729_v23, %v1662_v17  ;;  %v2976_v26 = vpop.f32.mrb[13].mxu1 }
 0xcda   : > { %v1736_v29 = vmul.f32 %v4427_v6, %v1730_v54  ;;  %v1872_v54 = vstv %s1871_s6 }
 0xcdc   : > { %v1737_v61 = vadd.f32 %v1736_v29, %v1735_v55 }
 0xcde   : > { %vm1738_vm14 = vcmp.ge.f32.partialorder %v1737_v61, %v1650_v59  ;;  %v1742_v62 = vsub.f32 %v1737_v61, %v1650_v59 }
 0xcdf   : > { %v2196_v0 = vsel %vm1738_vm14, 1.0, %v3810_v10 }
 0xce0   : > { %v1741_v1 = vsub.f32 1.0, %v2196_v0  ;;  %v2197_v2 = vmul.f32 -1.442695, %v1742_v62  ;;  %v1760_v3 = vmul.f32 %v2196_v0, %v1759_v63  ;;  %v1754_v32 = vmul.f32 %v4463_v45, %v2196_v0 }
 0xce2   : > { %3573 = vpow2.f32 %v2197_v2  ;;  %v1761_v12 = vmul.f32 %v1741_v1, %v1737_v61  ;;  %v1751_v15 = vmul.f32 %v1750_v9, %v1741_v1  ;;  %v1755_v43 = vadd.f32 %v1754_v32, %v1753_v37 }
 0xce4   : > { %v1762_v16 = vadd.f32 %v1761_v12, %v1760_v3  ;;  %v1752_v18 = vadd.f32 %v2196_v0, %v1751_v15  ;;  %v1858_v59 = vmul.f32 %v4466_v49, %v1755_v43 }
 0xce6   : > { %1763 = vst [vmem:[%s3999_s10 + $0xd] sm:$0x1] %v1762_v16  ;;  %3010 = vmatmul.mubr.f32.vlgmr.msra.gmra.mrb[14].mxu0 %v1752_v18  ;;  %v1861_v22 = vsub.f32 %v1762_v16, %v4390_v39  ;;  %v1838_v24 = vsub.f32 %v4390_v39, %v1762_v16  ;;  %v1854_v34 = vmul.f32 %v4431_v13, %v1752_v18 }
 0xce8   : > { %v1839_v27 = vmul.f32 %v4419_v58, %v1838_v24  ;;  %v1862_v28 = vmul.f32 %v4422_v60, %v1861_v22  ;;  %v1855_v52 = vsub.f32 %v1752_v18, %v1854_v34 }
 0xcea   : > { %v1840_v38 = vadd.f32 %v1839_v27, %v1762_v16  ;;  %v1863_v31 = vadd.f32 %v4390_v39, %v1862_v28 }
 0xcec   : > { %v3574_v4 = vpop.eup %3573  ;;  %v1864_v46 = vsub.f32 %v1863_v31, %v4434_v19 }
 0xced   : > { %v1746_v5 = vadd.f32 1.0, %v3574_v4 }
 0xcef   : > { %3575 = vrcp.f32 %v1746_v5 }
 0xcf9   : > { %v3576_v21 = vpop.eup %3575 }
 0xcfa   : > { %1764 = vst [vmem:[%s4001_s13 + $0xd] sm:$0x1] %v3576_v21 }
 0xdb9   : > { %v1834_v30 = vpop.f32.mrb[14].mxu0 }
 0xdba   : > { %v1835_v33 = vadd.f32 %v1834_v30, %v1767_v25  ;;  %v3011_v35 = vpop.f32.mrb[15].mxu0 }
 0xdbc   : > { %v1841_v42 = vmul.f32 %v4427_v6, %v1835_v33 }
 0xdbe   : > { %v1842_v36 = vadd.f32 %v1841_v42, %v1840_v38 }
 0xdc0   : > { %vm1843_vm15 = vcmp.ge.f32.partialorder %v1842_v36, %v1755_v43  ;;  %v1847_v44 = vsub.f32 %v1842_v36, %v1755_v43 }
 0xdc1   : > { %v2198_v47 = vsel %vm1843_vm15, 1.0, %v3810_v10 }
 0xdc2   : > { %v1846_v48 = vsub.f32 1.0, %v2198_v47  ;;  %v2199_v41 = vmul.f32 -1.442695, %v1847_v44  ;;  %v1865_v51 = vmul.f32 %v2198_v47, %v1864_v46  ;;  %v1859_v55 = vmul.f32 %v4463_v45, %v2198_v47 }
 0xdc4   : > { %3577 = vpow2.f32 %v2199_v41  ;;  %v1866_v53 = vmul.f32 %v1846_v48, %v1842_v36  ;;  %v1856_v8 = vmul.f32 %v1855_v52, %v1846_v48  ;;  %v1860_v1 = vadd.f32 %v1859_v55, %v1858_v59 }
 0xdc6   : > { %v1867_v11 = vadd.f32 %v1866_v53, %v1865_v51  ;;  %v1857_v14 = vadd.f32 %v2198_v47, %v1856_v8  ;;  %v1963_v12 = vmul.f32 %v4466_v49, %v1860_v1 }
 0xdc8   : > { %1868 = vst [vmem:[%s3999_s10 + $0xe] sm:$0x1] %v1867_v11  ;;  %3045 = vmatmul.mubr.f32.vlgmr.msra.gmra.mrb[14].mxu1 %v1857_v14  ;;  %v1966_v23 = vsub.f32 %v1867_v11, %v4390_v39  ;;  %v1943_v50 = vsub.f32 %v4390_v39, %v1867_v11  ;;  %v1959_v0 = vmul.f32 %v4431_v13, %v1857_v14 }
 0xdca   : > { %v1944_v26 = vmul.f32 %v4419_v58, %v1943_v50  ;;  %v1967_v7 = vmul.f32 %v4422_v60, %v1966_v23  ;;  %v1960_v3 = vsub.f32 %v1857_v14, %v1959_v0 }
 0xdcc   : > { %v1945_v61 = vadd.f32 %v1944_v26, %v1867_v11  ;;  %v1968_v63 = vadd.f32 %v4390_v39, %v1967_v7 }
 0xdce   : > { %v3578_v17 = vpop.eup %3577  ;;  %v1969_v60 = vsub.f32 %v1968_v63, %v4434_v19 }
 0xdcf   : > { %v1851_v20 = vadd.f32 1.0, %v3578_v17 }
 0xdd1   : > { %3579 = vrcp.f32 %v1851_v20 }
 0xddb   : > { %v3580_v40 = vpop.eup %3579 }
 0xddc   : > { %1869 = vst [vmem:[%s4001_s13 + $0xe] sm:$0x1] %v3580_v40 }
 0xe9b   : > { %v1939_v29 = vpop.f32.mrb[14].mxu1 }
 0xe9c   : > { %v1940_v56 = vadd.f32 %v1939_v29, %v1872_v54  ;;  %v3046_v57 = vpop.f32.mrb[15].mxu1 }
 0xe9e   : > { %v1946_v62 = vmul.f32 %v4427_v6, %v1940_v56 }
 0xea0   : > { %v1947_v2 = vadd.f32 %v1946_v62, %v1945_v61 }
 0xea2   : > { %vm1948_vm0 = vcmp.ge.f32.partialorder %v1947_v2, %v1860_v1  ;;  %v1952_v58 = vsub.f32 %v1947_v2, %v1860_v1 }
 0xea3   : > { %v2200_v9 = vsel %vm1948_vm0, 1.0, %v3810_v10 }
 0xea4   : > { %v1951_v15 = vsub.f32 1.0, %v2200_v9  ;;  %v2201_v16 = vmul.f32 -1.442695, %v1952_v58  ;;  %v1964_v6 = vmul.f32 %v4463_v45, %v2200_v9  ;;  %v1970_v39 = vmul.f32 %v2200_v9, %v1969_v60 }
 0xea6   : > { %3581 = vpow2.f32 %v2201_v16  ;;  %v1961_v13 = vmul.f32 %v1960_v3, %v1951_v15  ;;  %v1965_v18 = vadd.f32 %v1964_v6, %v1963_v12  ;;  %v1971_v4 = vmul.f32 %v1951_v15, %v1947_v2 }
 0xea8   : > { %v1962_v5 = vadd.f32 %v2200_v9, %v1961_v13  ;;  %v1972_v21 = vadd.f32 %v1971_v4, %v1970_v39  ;;  %1977 = vst [vmem:[#allocation4] sm:$0x1] %v1965_v18  ;;  %1984 = vst [vmem:[#allocation15 + $0x2] sm:$0x1] (!%p2202_p10), %v1965_v18 }
 0xeaa   : > { %1973 = vst [vmem:[%s3999_s10 + $0xf] sm:$0x1] %v1972_v21  ;;  %1975 = vst [vmem:[#allocation2] sm:$0x1] %v1972_v21 }
 0xeab   : > { %1976 = vst [vmem:[#allocation3] sm:$0x1] %v1962_v5  ;;  %1982 = vst [vmem:[#allocation15] sm:$0x1] (!%p2202_p10), %v1972_v21 }
 0xeac   : > { %1983 = vst [vmem:[#allocation15 + $0x1] sm:$0x1] (!%p2202_p10), %v1962_v5 }
 0xeb0   : > { %v3582_v19 = vpop.eup %3581 }
 0xeb1   : > { %v1956_v10 = vadd.f32 1.0, %v3582_v19 }
 0xeb3   : > { %3583 = vrcp.f32 %v1956_v10 }
 0xeb8   : > { %1981 = sbr.rel (%p2202_p10) target bundleno = 3775 (0xebf), region = 52 }
 0xebd   : > { %v3584_v49 = vpop.eup %3583 }
 0xebe   : > { %1974 = vst [vmem:[%s4001_s13 + $0xf] sm:$0x1] %v3584_v49 }
 0xebf PF: > { %s1990_s26 = sand.u32 1, %s3867_s22   ;;  %s2213_s9 = sshll.u32 %s3867_s22, 8 }
 0xec0   : > { %s4574_s2 = scalar_lea.hbm %s4691_s4, %s2213_s9  ;;  %s2020_s23 = sshll.u32 %s4001_s13, 4  ;;  %s4577_s23 = int_to_ptr.vmem [resolvable:$true] %s2020_s23 }
 0xec1   : > { %s4582_s8 = scalar_lea.hbm %s4690_s3, %s2213_s9  ;;  %s4584_s12 = scalar_lea.sflag [#allocation14], %s1990_s26 }
 0xec2   : > { %s3664_s14 = scalar_lea.vmem %s4577_s23, 256  ;;  %s3811_s17 = smov [#allocation13]  }
 0xec3   : > { %p3665_p4 = scmp.ne.s32.totalorder %s4577_s23, %s3664_s14  ;;  %s3668_s25 = sshll.u32 %s3811_s17, 4  ;;  %s3669_s25 = int_to_ptr.vmem [resolvable:$false] %s3668_s25 }
 0xec4   : > { %s3670_s13 = scalar_lea.vmem %s3669_s25, 512  ;;  %p3671_p12 = scmp.lt.s32.totalorder %s4577_s23, %s3669_s25 }
 0xec5   : > { %p3666_p7 = pnand %p3665_p4, %p3888_p5  ;;  %p3672_p0 = scmp.lt.s32.totalorder %s3670_s13, %s3664_s14 }
 0xec7   : > { %p3667_p8 = pneg %p3666_p7  ;;  %p3673_p3 = por %p3672_p0, %p3671_p12 }
 0xec9   : > { %p3674_p1 = pnand %p3673_p3, %p3667_p8 }
 0xecb   : > { %3677 = shalt.err (!%p3674_p1)
}
 0xecc   : > { %s3678_s6 = scalar_lea.hbm %s4574_s2, 256  ;;  %s3682_s11 = scalar_lea.hbm %s4691_s4, 1024 }
 0xecd   : > { %p3679_p2 = scmp.ne.s32.totalorder %s4574_s2, %s3678_s6  ;;  %p3683_p13 = scmp.lt.u32.totalorder %s4574_s2, %s4691_s4 }
 0xece   : > { %p3684_p11 = scmp.lt.u32.totalorder %s3682_s11, %s3678_s6  ;;  %p3686_p4 = scmp.lt.u32.totalorder %s3678_s6, %s4574_s2 }
 0xecf   : > { %p3680_p6 = pnand %p3679_p2, %p3888_p5 }
 0xed0   : > { %p3685_p10 = por %p3684_p11, %p3683_p13 }
 0xed1   : > { %p3681_p9 = pneg %p3680_p6 }
 0xed2   : > { %p3687_p7 = por %p3686_p4, %p3685_p10 }
 0xed4   : > { %p3688_p8 = pnand %p3687_p7, %p3681_p9 }
 0xed6   : > { %3691 = shalt.err (!%p3688_p8)
}
 0xed7   : > { %s3812_s16 = smov 128   ;;  %s3813_s14 = smov 8  }
 0xed8   : > { %3444 = dma.vmem_to_hbm [thread:$0]  (%p3888_p5), %s4577_s23, 256, %s4574_s2, %s4584_s12, %s3812_s16, %s3812_s16, %s3813_s14  }
 0xed9   : > { %s2004_s17 = sshll.u32 %s3999_s10, 4  ;;  %s3814_s25 = smov [#allocation15]   ;;  %s4612_s17 = int_to_ptr.vmem [resolvable:$true] %s2004_s17 }
 0xeda   : > { %s4614_s13 = sshll.u32 %s3814_s25, 4  ;;  %s4618_s6 = scalar_lea.sflag [#allocation7], %s243_s30  ;;  %s2035_s13 = int_to_ptr.vmem [resolvable:$true] %s4614_s13 }
 0xedb   : > { %s3692_s26 = scalar_lea.vmem %s4612_s17, 256  ;;  %s3815_s9 = smov [#allocation12]  }
 0xedc   : > { %p3693_p12 = scmp.ne.s32.totalorder %s4612_s17, %s3692_s26  ;;  %s3696_s11 = sshll.u32 %s3815_s9, 4  ;;  %s3697_s11 = int_to_ptr.vmem [resolvable:$false] %s3696_s11 }
 0xedd   : > { %s3698_s10 = scalar_lea.vmem %s3697_s11, 512  ;;  %p3699_p1 = scmp.lt.s32.totalorder %s4612_s17, %s3697_s11 }
 0xede   : > { %p3694_p0 = pnand %p3693_p12, %p3888_p5  ;;  %p3700_p2 = scmp.lt.s32.totalorder %s3698_s10, %s3692_s26 }
 0xee0   : > { %p3695_p3 = pneg %p3694_p0  ;;  %p3701_p6 = por %p3700_p2, %p3699_p1 }
 0xee2   : > { %p3702_p9 = pnand %p3701_p6, %p3695_p3 }
 0xee4   : > { %3705 = shalt.err (!%p3702_p9)
}
 0xee5   : > { %s3706_s30 = scalar_lea.hbm %s4582_s8, 256  ;;  %s3710_s12 = scalar_lea.hbm %s4690_s3, 1024 }
 0xee6   : > { %p3707_p13 = scmp.ne.s32.totalorder %s4582_s8, %s3706_s30  ;;  %p3711_p4 = scmp.lt.u32.totalorder %s4582_s8, %s4690_s3 }
 0xee7   : > { %p3712_p7 = scmp.lt.u32.totalorder %s3710_s12, %s3706_s30  ;;  %p3714_p12 = scmp.lt.u32.totalorder %s3706_s30, %s4582_s8 }
 0xee8   : > { %p3708_p11 = pnand %p3707_p13, %p3888_p5 }
 0xee9   : > { %p3713_p8 = por %p3712_p7, %p3711_p4 }
 0xeea   : > { %p3709_p10 = pneg %p3708_p11 }
 0xeeb   : > { %p3715_p0 = por %p3714_p12, %p3713_p8 }
 0xeed   : > { %p3716_p3 = pnand %p3715_p0, %p3709_p10 }
 0xeef   : > { %3719 = shalt.err (!%p3716_p3)
}
 0xef0   : > { %3443 = dma.vmem_to_hbm [thread:$0]  (%p3888_p5), %s4612_s17, 256, %s4582_s8, %s4618_s6, %s3812_s16, %s3812_s16, %s3813_s14  }
 0xef1   : > { %s3720_s25 = scalar_lea.vmem %s2035_s13, 128  ;;  %p4710_p2 = scmp.eq.s32.totalorder %s3867_s22, 3 }
 0xef2   : > { %p3721_p1 = scmp.ne.s32.totalorder %s2035_s13, %s3720_s25  ;;  %p3727_p13 = scmp.lt.s32.totalorder %s2035_s13, %s2035_s13 }
 0xef3   : > { %p3728_p11 = scmp.lt.s32.totalorder %s3720_s25, %s3720_s25 }
 0xef4   : > { %p3722_p6 = pnand %p3721_p1, %p4710_p2 }
 0xef5   : > { %p3729_p10 = por %p3728_p11, %p3727_p13 }
 0xef6   : > { %p3723_p9 = pneg %p3722_p6 }
 0xef8   : > { %p3730_p4 = pnand %p3729_p10, %p3723_p9 }
 0xefa   : > { %3733 = shalt.err (!%p3730_p4)
}
 0xefb   : > { %s3734_s9 = scalar_lea.hbm %s4692_s5, 128  ;;  %p4711_p7 = pmov %p4710_p2 }
 0xefc   : > { %p3735_p5 = scmp.ne.s32.totalorder %s4692_s5, %s3734_s9  ;;  %p3740_p0 = scmp.lt.u32.totalorder %s3734_s9, %s4692_s5 }
 0xefe   : > { %p3736_p8 = pnand %p3735_p5, %p4711_p7 }
 0xf00   : > { %p3737_p12 = pneg %p3736_p8 }
 0xf02   : > { %p3742_p3 = pnand %p3740_p0, %p3737_p12 }
 0xf04   : > { %3745 = shalt.err (!%p3742_p3)
}
 0xf05   : > { %p4712_p1 = pmov %p4710_p2 }
 0xf07   : > { %3446 = dma.vmem_to_hbm [thread:$0]  (%p4712_p1), %s2035_s13, 128, %s4692_s5, [#allocation14]  }
 0xf08   : > { %p4713_p2 = pmov %p4712_p1 }
 0xf09   : > { %p4714_p6 = pmov %p4712_p1 }
 0xf0a   : > { %3775 = dma.done.wait (%p4713_p2), [#allocation14], 128  }
 0xf0b   : > { %3777 = vsyncadd (%p4714_p6), [#allocation14], 4294967168 }
 0xf0c PF: > { %p3476_p9 = scmp.ge.s32.totalorder %s3800_s21, 2  ;;  %s2050_s6 = sand.u32 1, %s3788_s18  }
 0xf0d   : > { %p4715_p13 = scmp.ne.s32.totalorder %s4698_s29, 0  ;;  %s2051_s30 = scalar_lea.sflag [#allocation7], %s2050_s6 }
 0xf0f   : > { %p3462_p11 = pnand %p3476_p9, %p4715_p13 }
 0xf11   : > { %3779 = dma.done.wait (!%p3462_p11), %s2051_s30, 256  }
 0xf12   : > { %3781 = vsyncadd (!%p3462_p11), %s2051_s30, 4294967040  ;;  %s4716_s2 = sadd.s32 4294967294, %s3800_s21  }
 0xf13   : > { %s2059_s23 = sand.u32 1, %s4716_s2  }
 0xf14   : > { %s2060_s13 = scalar_lea.sflag [#allocation14], %s2059_s23 }
 0xf15   : > { %3783 = dma.done.wait (!%p3462_p11), %s2060_s13, 256  }
 0xf16   : > { %3785 = vsyncadd (!%p3462_p11), %s2060_s13, 4294967040  ;;  %p22_p10 = scmp.ge.s32.totalorder %s3871_s24, 6   ;;  %s4717_s18 = smov %s3792_s19 }
 0xf17   : > { %s4718_s19 = smov %s3796_s20  ;;  %s4719_s20 = smov %s3884_s27 }
 0xf18   : > { %s4720_s21 = smov %s3871_s24  ;;  %24 = sbr.rel (!%p22_p10) target bundleno = 10 (0xa), region = 111 }
 0xf1f   :  { %2065 = vsyncpa [#allocation6], 1 }
 0xf20   :  { %2067 = vsyncpa [#allocation6 + $0x1], 1 }
 0xf21   :  { %2068 = vsyncpa [#allocation10], 1 }
 0xf22   :  { %2069 = vsyncpa [#allocation7], 1 }
 0xf23   :  { %2071 = vsyncpa [#allocation7 + $0x1], 1 }
 0xf24   :  { %2072 = vsyncpa [#allocation14], 1 }
 0xf25   :  { %2074 = vsyncpa [#allocation14 + $0x1], 1 }
 0xf26   :  { %2075 = vsyncpa [#allocation8], 1 }
 0xf27   :  { %2077 = vsyncpa [#allocation8 + $0x1], 1 }

</bundles_post_ra>
